<compile_context>
chip_gen: v6e
topology: v6e:2x2x1
jax: 0.10.0
libtpu: 0.0.40
codegen_flags: <defaults>
</compile_context>

<pallas_src>
import math
import functools

import jax
import jax.numpy as jnp
from jax.experimental import pallas as pl
from jax.experimental.pallas import tpu as pltpu


# ----------------------------- config (small) -----------------------------
HIDDEN = 32          # hidden_size (embed_dim)
INTER = 64           # intermediate_size
NUM_LAYERS = 2       # num_hidden_layers
NUM_CHANNELS = 3     # num_channels
NUM_HEADS = 4        # num_attention_heads
IMAGE_SIZE = 16      # image_size
PATCH_SIZE = 8       # patch_size
LN_EPS = 1e-12       # layer_norm_eps
HEAD_DIM = HIDDEN // NUM_HEADS
NUM_PATCHES = (IMAGE_SIZE // PATCH_SIZE) ** 2   # seq_len per image


# ------------------------------ fused kernel ------------------------------
def _fused_forward_kernel(
    # inputs
    patches_ref, patch_w_ref, patch_b_ref, pos_ref,
    ln1_g_ref, ln1_b_ref, qkv_w_ref, qkv_b_ref, o_w_ref, o_b_ref,
    ln2_g_ref, ln2_b_ref, fc1_w_ref, fc1_b_ref, fc2_w_ref, fc2_b_ref,
    post_g_ref, post_b_ref,
    # output
    out_ref,
    # VMEM scratch
    qkv_scr, attn_scr,
    *, batch, seq):
  """Whole SiglipVisualTransformer forward; everything VMEM-resident."""
  E = HIDDEN
  Dh = HEAD_DIM
  scale = Dh ** (-0.5)

  def layer_norm(x, g, b):
    mean = jnp.mean(x, axis=-1, keepdims=True)
    var = jnp.mean((x - mean) ** 2, axis=-1, keepdims=True)
    return (x - mean) * jax.lax.rsqrt(var + LN_EPS) * g + b

  def gelu_tanh(x):
    c = math.sqrt(2.0 / math.pi)
    return 0.5 * x * (1.0 + jnp.tanh(c * (x + 0.044715 * x * x * x)))

  # --- patch embedding (conv rewritten as matmul) + position embedding ---
  x = jnp.dot(patches_ref[...], patch_w_ref[...],
              preferred_element_type=jnp.float32)
  x = x + patch_b_ref[...] + pos_ref[...]                  # (M, E)

  # --- encoder layers (statically unrolled; weights stacked on axis 0) ---
  for l in range(NUM_LAYERS):
    # LayerNorm1 + packed QKV projection (one MXU pass).
    ln1_x = layer_norm(x, ln1_g_ref[l], ln1_b_ref[l])
    qkv = jnp.dot(ln1_x, qkv_w_ref[l], preferred_element_type=jnp.float32)
    qkv_scr[...] = qkv + qkv_b_ref[l]                       # (M, 3E)

    # Multi-head attention: all B*H heads handled here, fully unrolled,
    # reading (S, Dh) slices straight out of the VMEM scratch (no HBM,
    # no wrapper transposes, no per-head grid steps).
    for b in range(batch):
      r0 = b * seq
      for h in range(NUM_HEADS):
        c0 = h * Dh
        q = qkv_scr[r0:r0 + seq, c0:c0 + Dh]
        k = qkv_scr[r0:r0 + seq, E + c0:E + c0 + Dh]
        v = qkv_scr[r0:r0 + seq, 2 * E + c0:2 * E + c0 + Dh]
        # q @ k^T without materializing k.T (rhs consumed in stored layout).
        s = jax.lax.dot_general(
            q, k, (((1,), (1,)), ((), ())),
            preferred_element_type=jnp.float32) * scale
        s = s - jnp.max(s, axis=-1, keepdims=True)
        p = jnp.exp(s)
        p = p * pl.reciprocal(jnp.sum(p, axis=-1, keepdims=True), approx=True)
        attn_scr[r0:r0 + seq, c0:c0 + Dh] = jnp.dot(
            p, v, preferred_element_type=jnp.float32)

    # Output projection + residual.
    attn_out = jnp.dot(attn_scr[...], o_w_ref[l],
                       preferred_element_type=jnp.float32) + o_b_ref[l]
    h1 = attn_out + x

    # Reference-module dataflow:  out = MLP(h1) + LN2(h1)
    ln2_h1 = layer_norm(h1, ln2_g_ref[l], ln2_b_ref[l])
    m = jnp.dot(h1, fc1_w_ref[l],
                preferred_element_type=jnp.float32) + fc1_b_ref[l]
    m = gelu_tanh(m)
    m = jnp.dot(m, fc2_w_ref[l],
                preferred_element_type=jnp.float32) + fc2_b_ref[l]
    x = m + ln2_h1

  # --- post LayerNorm + single store of the final hidden state ---
  # (Output is only B*S*E*4 = 1 KiB here; at real SigLIP sizes this should be
  # written as a lane-dense (B, S*E) slab instead of a 32-lane masked store.)
  out_ref[...] = layer_norm(x, post_g_ref[...], post_b_ref[...]).astype(
      out_ref.dtype)


# ------------------------------ model forward ------------------------------
def _vmem_spec(shape):
  return pl.BlockSpec(shape, lambda i: (0,) * len(shape))


def siglip_visual_forward(params, pixel_values):
  """pixel_values: NCHW (B, C, H, W) float32, like nn.Conv2d input."""
  B, C, H, W = pixel_values.shape
  P = PATCH_SIZE
  nH, nW = H // P, W // P
  S = nH * nW
  M = B * S
  E = HIDDEN
  I = INTER
  L = NUM_LAYERS
  CPP = C * P * P

  # Patch extraction: layout glue only (stride==kernel "valid" conv).
  patches = pixel_values.reshape(B, C, nH, P, nW, P)
  patches = patches.transpose(0, 2, 4, 1, 3, 5).reshape(M, CPP)
  # Position embedding broadcast over batch (tiny, done outside the kernel).
  pos = jnp.tile(params["pos_emb"], (B, 1))                 # (M, E)

  kernel = functools.partial(_fused_forward_kernel, batch=B, seq=S)

  out = pl.pallas_call(
      kernel,
      out_shape=jax.ShapeDtypeStruct((M, E), jnp.float32),
      grid=(1,),
      in_specs=[
          _vmem_spec((M, CPP)),        # patches
          _vmem_spec((CPP, E)),        # patch_w
          _vmem_spec((1, E)),          # patch_b
          _vmem_spec((M, E)),          # pos (tiled)
          _vmem_spec((L, 1, E)),       # ln1_g
          _vmem_spec((L, 1, E)),       # ln1_b
          _vmem_spec((L, E, 3 * E)),   # qkv_w (packed Q|K|V)
          _vmem_spec((L, 1, 3 * E)),   # qkv_b
          _vmem_spec((L, E, E)),       # o_w
          _vmem_spec((L, 1, E)),       # o_b
          _vmem_spec((L, 1, E)),       # ln2_g
          _vmem_spec((L, 1, E)),       # ln2_b
          _vmem_spec((L, E, I)),       # fc1_w
          _vmem_spec((L, 1, I)),       # fc1_b
          _vmem_spec((L, I, E)),       # fc2_w
          _vmem_spec((L, 1, E)),       # fc2_b
          _vmem_spec((1, E)),          # post_ln gamma
          _vmem_spec((1, E)),          # post_ln beta
      ],
      out_specs=_vmem_spec((M, E)),
      scratch_shapes=[
          pltpu.VMEM((M, 3 * E), jnp.float32),   # packed QKV activations
          pltpu.VMEM((M, E), jnp.float32),       # assembled attention output
      ],
      compiler_params=pltpu.CompilerParams(
          dimension_semantics=("arbitrary",)),
  )(patches, params["patch_w"], params["patch_b"], pos,
    params["ln1_g"], params["ln1_b"], params["qkv_w"], params["qkv_b"],
    params["o_w"], params["o_b"], params["ln2_g"], params["ln2_b"],
    params["fc1_w"], params["fc1_b"], params["fc2_w"], params["fc2_b"],
    params["post_g"], params["post_b"])

  return out.reshape(B, S, E)


# ------------------------------ parameter init ------------------------------
def init_params(key):
  E, I, L = HIDDEN, INTER, NUM_LAYERS
  CPP = NUM_CHANNELS * PATCH_SIZE * PATCH_SIZE

  def nrm(k, shape, std=0.02):
    return jax.random.normal(k, shape, jnp.float32) * std

  ks = jax.random.split(key, 11)
  return {
      # conv weight (E, C, P, P) stored as (C*P*P, E) for the matmul form
      "patch_w": nrm(ks[0], (CPP, E)),
      "patch_b": nrm(ks[1], (1, E)),
      "pos_emb": nrm(ks[2], (NUM_PATCHES, E)),
      # per-layer weights stacked on a leading layer axis
      "ln1_g": jnp.ones((L, 1, E), jnp.float32),
      "ln1_b": jnp.zeros((L, 1, E), jnp.float32),
      "ln2_g": jnp.ones((L, 1, E), jnp.float32),
      "ln2_b": jnp.zeros((L, 1, E), jnp.float32),
      "qkv_w": nrm(ks[3], (L, E, 3 * E)),     # packed [Q | K | V]
      "qkv_b": nrm(ks[4], (L, 1, 3 * E)),
      "o_w": nrm(ks[5], (L, E, E)),
      "o_b": nrm(ks[6], (L, 1, E)),
      "fc1_w": nrm(ks[7], (L, E, I)),
      "fc1_b": nrm(ks[8], (L, 1, I)),
      "fc2_w": nrm(ks[9], (L, I, E)),
      "fc2_b": nrm(ks[10], (L, 1, E)),
      "post_g": jnp.ones((1, E), jnp.float32),
      "post_b": jnp.zeros((1, E), jnp.float32),
  }


# ----------------------------------- main -----------------------------------
if __name__ == "__main__":
  key = jax.random.PRNGKey(0)
  pkey, xkey = jax.random.split(key)
  params = init_params(pkey)

  # pixel_values: NCHW, B=2, C=3, H=W=16
  pixel_values = jax.random.normal(
      xkey, (2, NUM_CHANNELS, IMAGE_SIZE, IMAGE_SIZE), jnp.float32)

  fwd = jax.jit(siglip_visual_forward)
  out = fwd(params, pixel_values)
  out = jax.block_until_ready(out)

  expected_shape = (2, NUM_PATCHES, HIDDEN)
  assert out.shape == expected_shape, (out.shape, expected_shape)
  assert bool(jnp.all(jnp.isfinite(out)))
  print("KERNEL_OK")
</pallas_src>

<mosaic_0001>
module attributes {stable_mosaic.version = 11 : i64} {
  func.func @_fused_forward_kernel(%arg0: i32, %arg1: memref<8x192xf32, #tpu.memory_space<vmem>>, %arg2: memref<192x32xf32, #tpu.memory_space<vmem>>, %arg3: memref<1x32xf32, #tpu.memory_space<vmem>>, %arg4: memref<8x32xf32, #tpu.memory_space<vmem>>, %arg5: memref<2x1x32xf32, #tpu.memory_space<vmem>>, %arg6: memref<2x1x32xf32, #tpu.memory_space<vmem>>, %arg7: memref<2x32x96xf32, #tpu.memory_space<vmem>>, %arg8: memref<2x1x96xf32, #tpu.memory_space<vmem>>, %arg9: memref<2x32x32xf32, #tpu.memory_space<vmem>>, %arg10: memref<2x1x32xf32, #tpu.memory_space<vmem>>, %arg11: memref<2x1x32xf32, #tpu.memory_space<vmem>>, %arg12: memref<2x1x32xf32, #tpu.memory_space<vmem>>, %arg13: memref<2x32x64xf32, #tpu.memory_space<vmem>>, %arg14: memref<2x1x64xf32, #tpu.memory_space<vmem>>, %arg15: memref<2x64x32xf32, #tpu.memory_space<vmem>>, %arg16: memref<2x1x32xf32, #tpu.memory_space<vmem>>, %arg17: memref<1x32xf32, #tpu.memory_space<vmem>>, %arg18: memref<1x32xf32, #tpu.memory_space<vmem>>, %arg19: memref<8x32xf32, #tpu.memory_space<vmem>>, %arg20: memref<8x96xf32, #tpu.memory_space<vmem>>, %arg21: memref<8x32xf32, #tpu.memory_space<vmem>>) attributes {dimension_semantics = [#tpu.dimension_semantics<arbitrary>], iteration_bounds = array<i64: 1>, scalar_prefetch = 0 : i64, scratch_operands = 2 : i64, tpu.core_type = #tpu.core_type<tc>, window_params = [{pipeline_mode = #tpu.pipeline_mode<synchronous>, transform_indices = @transform_0, window_bounds = array<i64: 8, 192>}, {pipeline_mode = #tpu.pipeline_mode<synchronous>, transform_indices = @transform_1, window_bounds = array<i64: 192, 32>}, {pipeline_mode = #tpu.pipeline_mode<synchronous>, transform_indices = @transform_2, window_bounds = array<i64: 1, 32>}, {pipeline_mode = #tpu.pipeline_mode<synchronous>, transform_indices = @transform_3, window_bounds = array<i64: 8, 32>}, {pipeline_mode = #tpu.pipeline_mode<synchronous>, transform_indices = @transform_4, window_bounds = array<i64: 2, 1, 32>}, {pipeline_mode = #tpu.pipeline_mode<synchronous>, transform_indices = @transform_5, window_bounds = array<i64: 2, 1, 32>}, {pipeline_mode = #tpu.pipeline_mode<synchronous>, transform_indices = @transform_6, window_bounds = array<i64: 2, 32, 96>}, {pipeline_mode = #tpu.pipeline_mode<synchronous>, transform_indices = @transform_7, window_bounds = array<i64: 2, 1, 96>}, {pipeline_mode = #tpu.pipeline_mode<synchronous>, transform_indices = @transform_8, window_bounds = array<i64: 2, 32, 32>}, {pipeline_mode = #tpu.pipeline_mode<synchronous>, transform_indices = @transform_9, window_bounds = array<i64: 2, 1, 32>}, {pipeline_mode = #tpu.pipeline_mode<synchronous>, transform_indices = @transform_10, window_bounds = array<i64: 2, 1, 32>}, {pipeline_mode = #tpu.pipeline_mode<synchronous>, transform_indices = @transform_11, window_bounds = array<i64: 2, 1, 32>}, {pipeline_mode = #tpu.pipeline_mode<synchronous>, transform_indices = @transform_12, window_bounds = array<i64: 2, 32, 64>}, {pipeline_mode = #tpu.pipeline_mode<synchronous>, transform_indices = @transform_13, window_bounds = array<i64: 2, 1, 64>}, {pipeline_mode = #tpu.pipeline_mode<synchronous>, transform_indices = @transform_14, window_bounds = array<i64: 2, 64, 32>}, {pipeline_mode = #tpu.pipeline_mode<synchronous>, transform_indices = @transform_15, window_bounds = array<i64: 2, 1, 32>}, {pipeline_mode = #tpu.pipeline_mode<synchronous>, transform_indices = @transform_16, window_bounds = array<i64: 1, 32>}, {pipeline_mode = #tpu.pipeline_mode<synchronous>, transform_indices = @transform_17, window_bounds = array<i64: 1, 32>}, {pipeline_mode = #tpu.pipeline_mode<synchronous>, transform_indices = @transform_18, window_bounds = array<i64: 8, 32>}]} {
    %c0 = arith.constant 0 : index
    %c0_0 = arith.constant 0 : index
    %0 = vector.load %arg1[%c0, %c0_0] : memref<8x192xf32, #tpu.memory_space<vmem>>, vector<8x192xf32>
    %c0_1 = arith.constant 0 : index
    %c0_2 = arith.constant 0 : index
    %1 = vector.load %arg2[%c0_1, %c0_2] : memref<192x32xf32, #tpu.memory_space<vmem>>, vector<192x32xf32>
    %cst = arith.constant dense<0.000000e+00> : vector<8x32xf32>
    %2 = tpu.matmul %0, %1, %cst {dimension_numbers = #tpu.dot_dimension_numbers<[1], [0], [0], [1], [0, 0, 1, 1], [], []>} : vector<8x192xf32>, vector<192x32xf32>, vector<8x32xf32> -> vector<8x32xf32>
    %c0_3 = arith.constant 0 : index
    %c0_4 = arith.constant 0 : index
    %3 = vector.load %arg3[%c0_3, %c0_4] : memref<1x32xf32, #tpu.memory_space<vmem>>, vector<1x32xf32>
    %4 = vector.broadcast %3 : vector<1x32xf32> to vector<8x32xf32>
    %5 = arith.addf %2, %4 : vector<8x32xf32>
    %c0_5 = arith.constant 0 : index
    %c0_6 = arith.constant 0 : index
    %6 = vector.load %arg4[%c0_5, %c0_6] : memref<8x32xf32, #tpu.memory_space<vmem>>, vector<8x32xf32>
    %7 = arith.addf %5, %6 : vector<8x32xf32>
    %c0_7 = arith.constant 0 : index
    %c0_8 = arith.constant 0 : index
    %c0_9 = arith.constant 0 : index
    %8 = vector.load %arg5[%c0_7, %c0_8, %c0_9] : memref<2x1x32xf32, #tpu.memory_space<vmem>>, vector<1x1x32xf32>
    %9 = vector.shape_cast %8 : vector<1x1x32xf32> to vector<1x32xf32>
    %c0_10 = arith.constant 0 : index
    %c0_11 = arith.constant 0 : index
    %c0_12 = arith.constant 0 : index
    %10 = vector.load %arg6[%c0_10, %c0_11, %c0_12] : memref<2x1x32xf32, #tpu.memory_space<vmem>>, vector<1x1x32xf32>
    %11 = vector.shape_cast %10 : vector<1x1x32xf32> to vector<1x32xf32>
    %cst_13 = arith.constant dense<0.000000e+00> : vector<8xf32>
    %12 = vector.multi_reduction <add>, %7, %cst_13 [1] : vector<8x32xf32> to vector<8xf32>
    %13 = vector.shape_cast %12 : vector<8xf32> to vector<8x1xf32>
    %cst_14 = arith.constant 3.200000e+01 : f32
    %14 = vector.broadcast %cst_14 : f32 to vector<8x1xf32>
    %15 = arith.divf %13, %14 : vector<8x1xf32>
    %16 = vector.broadcast %15 : vector<8x1xf32> to vector<8x32xf32>
    %17 = arith.subf %7, %16 : vector<8x32xf32>
    %18 = arith.mulf %17, %17 : vector<8x32xf32>
    %cst_15 = arith.constant dense<0.000000e+00> : vector<8xf32>
    %19 = vector.multi_reduction <add>, %18, %cst_15 [1] : vector<8x32xf32> to vector<8xf32>
    %20 = vector.shape_cast %19 : vector<8xf32> to vector<8x1xf32>
    %cst_16 = arith.constant 3.200000e+01 : f32
    %21 = vector.broadcast %cst_16 : f32 to vector<8x1xf32>
    %22 = arith.divf %20, %21 : vector<8x1xf32>
    %23 = vector.broadcast %15 : vector<8x1xf32> to vector<8x32xf32>
    %24 = arith.subf %7, %23 : vector<8x32xf32>
    %cst_17 = arith.constant 9.99999996E-13 : f32
    %25 = vector.broadcast %cst_17 : f32 to vector<8x1xf32>
    %26 = arith.addf %22, %25 : vector<8x1xf32>
    %27 = math.rsqrt %26 : vector<8x1xf32>
    %28 = vector.broadcast %27 : vector<8x1xf32> to vector<8x32xf32>
    %29 = arith.mulf %24, %28 : vector<8x32xf32>
    %30 = vector.broadcast %9 : vector<1x32xf32> to vector<8x32xf32>
    %31 = arith.mulf %29, %30 : vector<8x32xf32>
    %32 = vector.broadcast %11 : vector<1x32xf32> to vector<8x32xf32>
    %33 = arith.addf %31, %32 : vector<8x32xf32>
    %c0_18 = arith.constant 0 : index
    %c0_19 = arith.constant 0 : index
    %c0_20 = arith.constant 0 : index
    %34 = vector.load %arg7[%c0_18, %c0_19, %c0_20] : memref<2x32x96xf32, #tpu.memory_space<vmem>>, vector<1x32x96xf32>
    %35 = vector.shape_cast %34 : vector<1x32x96xf32> to vector<32x96xf32>
    %cst_21 = arith.constant dense<0.000000e+00> : vector<8x96xf32>
    %36 = tpu.matmul %33, %35, %cst_21 {dimension_numbers = #tpu.dot_dimension_numbers<[1], [0], [0], [1], [0, 0, 1, 1], [], []>} : vector<8x32xf32>, vector<32x96xf32>, vector<8x96xf32> -> vector<8x96xf32>
    %c0_22 = arith.constant 0 : index
    %c0_23 = arith.constant 0 : index
    %c0_24 = arith.constant 0 : index
    %37 = vector.load %arg8[%c0_22, %c0_23, %c0_24] : memref<2x1x96xf32, #tpu.memory_space<vmem>>, vector<1x1x96xf32>
    %38 = vector.shape_cast %37 : vector<1x1x96xf32> to vector<1x96xf32>
    %39 = vector.broadcast %38 : vector<1x96xf32> to vector<8x96xf32>
    %40 = arith.addf %36, %39 : vector<8x96xf32>
    %c0_25 = arith.constant 0 : index
    %c0_26 = arith.constant 0 : index
    %41 = vector.load %arg20[%c0_25, %c0_26] : memref<8x96xf32, #tpu.memory_space<vmem>>, vector<8x96xf32>
    tpu.vector_store %arg20[%c0_25, %c0_26], %40 {strides = array<i32>} : memref<8x96xf32, #tpu.memory_space<vmem>>, vector<8x96xf32>,
    %c0_27 = arith.constant 0 : index
    %c0_28 = arith.constant 0 : index
    %42 = vector.load %arg20[%c0_27, %c0_28] : memref<8x96xf32, #tpu.memory_space<vmem>>, vector<4x8xf32>
    %c0_29 = arith.constant 0 : index
    %c32 = arith.constant 32 : index
    %43 = vector.load %arg20[%c0_29, %c32] : memref<8x96xf32, #tpu.memory_space<vmem>>, vector<4x8xf32>
    %c0_30 = arith.constant 0 : index
    %c64 = arith.constant 64 : index
    %44 = vector.load %arg20[%c0_30, %c64] : memref<8x96xf32, #tpu.memory_space<vmem>>, vector<4x8xf32>
    %cst_31 = arith.constant dense<0.000000e+00> : vector<4x4xf32>
    %45 = tpu.matmul %42, %43, %cst_31 {dimension_numbers = #tpu.dot_dimension_numbers<[1], [1], [0], [0], [0, 0, 1, 0], [], []>} : vector<4x8xf32>, vector<4x8xf32>, vector<4x4xf32> -> vector<4x4xf32>
    %cst_32 = arith.constant 0.353553385 : f32
    %46 = vector.broadcast %cst_32 : f32 to vector<4x4xf32>
    %47 = arith.mulf %45, %46 : vector<4x4xf32>
    %cst_33 = arith.constant dense<0xFF800000> : vector<4xf32>
    %48 = vector.multi_reduction <maximumf>, %47, %cst_33 [1] : vector<4x4xf32> to vector<4xf32>
    %49 = vector.shape_cast %48 : vector<4xf32> to vector<4x1xf32>
    %50 = vector.broadcast %49 : vector<4x1xf32> to vector<4x4xf32>
    %51 = arith.subf %47, %50 : vector<4x4xf32>
    %52 = math.exp %51 : vector<4x4xf32>
    %cst_34 = arith.constant dense<0.000000e+00> : vector<4xf32>
    %53 = vector.multi_reduction <add>, %52, %cst_34 [1] : vector<4x4xf32> to vector<4xf32>
    %54 = vector.shape_cast %53 : vector<4xf32> to vector<4x1xf32>
    %55 = tpu.reciprocal %54 {approx = true} : vector<4x1xf32> -> vector<4x1xf32>
    %56 = vector.broadcast %55 : vector<4x1xf32> to vector<4x4xf32>
    %57 = arith.mulf %52, %56 : vector<4x4xf32>
    %cst_35 = arith.constant dense<0.000000e+00> : vector<4x8xf32>
    %58 = tpu.matmul %57, %44, %cst_35 {dimension_numbers = #tpu.dot_dimension_numbers<[1], [0], [0], [1], [0, 0, 1, 1], [], []>} : vector<4x4xf32>, vector<4x8xf32>, vector<4x8xf32> -> vector<4x8xf32>
    %c0_36 = arith.constant 0 : index
    %c0_37 = arith.constant 0 : index
    %59 = vector.load %arg21[%c0_36, %c0_37] : memref<8x32xf32, #tpu.memory_space<vmem>>, vector<4x8xf32>
    tpu.vector_store %arg21[%c0_36, %c0_37], %58 {strides = array<i32>} : memref<8x32xf32, #tpu.memory_space<vmem>>, vector<4x8xf32>,
    %c0_38 = arith.constant 0 : index
    %c8 = arith.constant 8 : index
    %60 = vector.load %arg20[%c0_38, %c8] : memref<8x96xf32, #tpu.memory_space<vmem>>, vector<4x8xf32>
    %c0_39 = arith.constant 0 : index
    %c40 = arith.constant 40 : index
    %61 = vector.load %arg20[%c0_39, %c40] : memref<8x96xf32, #tpu.memory_space<vmem>>, vector<4x8xf32>
    %c0_40 = arith.constant 0 : index
    %c72 = arith.constant 72 : index
    %62 = vector.load %arg20[%c0_40, %c72] : memref<8x96xf32, #tpu.memory_space<vmem>>, vector<4x8xf32>
    %cst_41 = arith.constant dense<0.000000e+00> : vector<4x4xf32>
    %63 = tpu.matmul %60, %61, %cst_41 {dimension_numbers = #tpu.dot_dimension_numbers<[1], [1], [0], [0], [0, 0, 1, 0], [], []>} : vector<4x8xf32>, vector<4x8xf32>, vector<4x4xf32> -> vector<4x4xf32>
    %cst_42 = arith.constant 0.353553385 : f32
    %64 = vector.broadcast %cst_42 : f32 to vector<4x4xf32>
    %65 = arith.mulf %63, %64 : vector<4x4xf32>
    %cst_43 = arith.constant dense<0xFF800000> : vector<4xf32>
    %66 = vector.multi_reduction <maximumf>, %65, %cst_43 [1] : vector<4x4xf32> to vector<4xf32>
    %67 = vector.shape_cast %66 : vector<4xf32> to vector<4x1xf32>
    %68 = vector.broadcast %67 : vector<4x1xf32> to vector<4x4xf32>
    %69 = arith.subf %65, %68 : vector<4x4xf32>
    %70 = math.exp %69 : vector<4x4xf32>
    %cst_44 = arith.constant dense<0.000000e+00> : vector<4xf32>
    %71 = vector.multi_reduction <add>, %70, %cst_44 [1] : vector<4x4xf32> to vector<4xf32>
    %72 = vector.shape_cast %71 : vector<4xf32> to vector<4x1xf32>
    %73 = tpu.reciprocal %72 {approx = true} : vector<4x1xf32> -> vector<4x1xf32>
    %74 = vector.broadcast %73 : vector<4x1xf32> to vector<4x4xf32>
    %75 = arith.mulf %70, %74 : vector<4x4xf32>
    %cst_45 = arith.constant dense<0.000000e+00> : vector<4x8xf32>
    %76 = tpu.matmul %75, %62, %cst_45 {dimension_numbers = #tpu.dot_dimension_numbers<[1], [0], [0], [1], [0, 0, 1, 1], [], []>} : vector<4x4xf32>, vector<4x8xf32>, vector<4x8xf32> -> vector<4x8xf32>
    %c0_46 = arith.constant 0 : index
    %c8_47 = arith.constant 8 : index
    %77 = vector.load %arg21[%c0_46, %c8_47] : memref<8x32xf32, #tpu.memory_space<vmem>>, vector<4x8xf32>
    tpu.vector_store %arg21[%c0_46, %c8_47], %76 {strides = array<i32>} : memref<8x32xf32, #tpu.memory_space<vmem>>, vector<4x8xf32>,
    %c0_48 = arith.constant 0 : index
    %c16 = arith.constant 16 : index
    %78 = vector.load %arg20[%c0_48, %c16] : memref<8x96xf32, #tpu.memory_space<vmem>>, vector<4x8xf32>
    %c0_49 = arith.constant 0 : index
    %c48 = arith.constant 48 : index
    %79 = vector.load %arg20[%c0_49, %c48] : memref<8x96xf32, #tpu.memory_space<vmem>>, vector<4x8xf32>
    %c0_50 = arith.constant 0 : index
    %c80 = arith.constant 80 : index
    %80 = vector.load %arg20[%c0_50, %c80] : memref<8x96xf32, #tpu.memory_space<vmem>>, vector<4x8xf32>
    %cst_51 = arith.constant dense<0.000000e+00> : vector<4x4xf32>
    %81 = tpu.matmul %78, %79, %cst_51 {dimension_numbers = #tpu.dot_dimension_numbers<[1], [1], [0], [0], [0, 0, 1, 0], [], []>} : vector<4x8xf32>, vector<4x8xf32>, vector<4x4xf32> -> vector<4x4xf32>
    %cst_52 = arith.constant 0.353553385 : f32
    %82 = vector.broadcast %cst_52 : f32 to vector<4x4xf32>
    %83 = arith.mulf %81, %82 : vector<4x4xf32>
    %cst_53 = arith.constant dense<0xFF800000> : vector<4xf32>
    %84 = vector.multi_reduction <maximumf>, %83, %cst_53 [1] : vector<4x4xf32> to vector<4xf32>
    %85 = vector.shape_cast %84 : vector<4xf32> to vector<4x1xf32>
    %86 = vector.broadcast %85 : vector<4x1xf32> to vector<4x4xf32>
    %87 = arith.subf %83, %86 : vector<4x4xf32>
    %88 = math.exp %87 : vector<4x4xf32>
    %cst_54 = arith.constant dense<0.000000e+00> : vector<4xf32>
    %89 = vector.multi_reduction <add>, %88, %cst_54 [1] : vector<4x4xf32> to vector<4xf32>
    %90 = vector.shape_cast %89 : vector<4xf32> to vector<4x1xf32>
    %91 = tpu.reciprocal %90 {approx = true} : vector<4x1xf32> -> vector<4x1xf32>
    %92 = vector.broadcast %91 : vector<4x1xf32> to vector<4x4xf32>
    %93 = arith.mulf %88, %92 : vector<4x4xf32>
    %cst_55 = arith.constant dense<0.000000e+00> : vector<4x8xf32>
    %94 = tpu.matmul %93, %80, %cst_55 {dimension_numbers = #tpu.dot_dimension_numbers<[1], [0], [0], [1], [0, 0, 1, 1], [], []>} : vector<4x4xf32>, vector<4x8xf32>, vector<4x8xf32> -> vector<4x8xf32>
    %c0_56 = arith.constant 0 : index
    %c16_57 = arith.constant 16 : index
    %95 = vector.load %arg21[%c0_56, %c16_57] : memref<8x32xf32, #tpu.memory_space<vmem>>, vector<4x8xf32>
    tpu.vector_store %arg21[%c0_56, %c16_57], %94 {strides = array<i32>} : memref<8x32xf32, #tpu.memory_space<vmem>>, vector<4x8xf32>,
    %c0_58 = arith.constant 0 : index
    %c24 = arith.constant 24 : index
    %96 = vector.load %arg20[%c0_58, %c24] : memref<8x96xf32, #tpu.memory_space<vmem>>, vector<4x8xf32>
    %c0_59 = arith.constant 0 : index
    %c56 = arith.constant 56 : index
    %97 = vector.load %arg20[%c0_59, %c56] : memref<8x96xf32, #tpu.memory_space<vmem>>, vector<4x8xf32>
    %c0_60 = arith.constant 0 : index
    %c88 = arith.constant 88 : index
    %98 = vector.load %arg20[%c0_60, %c88] : memref<8x96xf32, #tpu.memory_space<vmem>>, vector<4x8xf32>
    %cst_61 = arith.constant dense<0.000000e+00> : vector<4x4xf32>
    %99 = tpu.matmul %96, %97, %cst_61 {dimension_numbers = #tpu.dot_dimension_numbers<[1], [1], [0], [0], [0, 0, 1, 0], [], []>} : vector<4x8xf32>, vector<4x8xf32>, vector<4x4xf32> -> vector<4x4xf32>
    %cst_62 = arith.constant 0.353553385 : f32
    %100 = vector.broadcast %cst_62 : f32 to vector<4x4xf32>
    %101 = arith.mulf %99, %100 : vector<4x4xf32>
    %cst_63 = arith.constant dense<0xFF800000> : vector<4xf32>
    %102 = vector.multi_reduction <maximumf>, %101, %cst_63 [1] : vector<4x4xf32> to vector<4xf32>
    %103 = vector.shape_cast %102 : vector<4xf32> to vector<4x1xf32>
    %104 = vector.broadcast %103 : vector<4x1xf32> to vector<4x4xf32>
    %105 = arith.subf %101, %104 : vector<4x4xf32>
    %106 = math.exp %105 : vector<4x4xf32>
    %cst_64 = arith.constant dense<0.000000e+00> : vector<4xf32>
    %107 = vector.multi_reduction <add>, %106, %cst_64 [1] : vector<4x4xf32> to vector<4xf32>
    %108 = vector.shape_cast %107 : vector<4xf32> to vector<4x1xf32>
    %109 = tpu.reciprocal %108 {approx = true} : vector<4x1xf32> -> vector<4x1xf32>
    %110 = vector.broadcast %109 : vector<4x1xf32> to vector<4x4xf32>
    %111 = arith.mulf %106, %110 : vector<4x4xf32>
    %cst_65 = arith.constant dense<0.000000e+00> : vector<4x8xf32>
    %112 = tpu.matmul %111, %98, %cst_65 {dimension_numbers = #tpu.dot_dimension_numbers<[1], [0], [0], [1], [0, 0, 1, 1], [], []>} : vector<4x4xf32>, vector<4x8xf32>, vector<4x8xf32> -> vector<4x8xf32>
    %c0_66 = arith.constant 0 : index
    %c24_67 = arith.constant 24 : index
    %113 = vector.load %arg21[%c0_66, %c24_67] : memref<8x32xf32, #tpu.memory_space<vmem>>, vector<4x8xf32>
    tpu.vector_store %arg21[%c0_66, %c24_67], %112 {strides = array<i32>} : memref<8x32xf32, #tpu.memory_space<vmem>>, vector<4x8xf32>,
    %c4 = arith.constant 4 : index
    %c0_68 = arith.constant 0 : index
    %114 = vector.load %arg20[%c4, %c0_68] : memref<8x96xf32, #tpu.memory_space<vmem>>, vector<4x8xf32>
    %c4_69 = arith.constant 4 : index
    %c32_70 = arith.constant 32 : index
    %115 = vector.load %arg20[%c4_69, %c32_70] : memref<8x96xf32, #tpu.memory_space<vmem>>, vector<4x8xf32>
    %c4_71 = arith.constant 4 : index
    %c64_72 = arith.constant 64 : index
    %116 = vector.load %arg20[%c4_71, %c64_72] : memref<8x96xf32, #tpu.memory_space<vmem>>, vector<4x8xf32>
    %cst_73 = arith.constant dense<0.000000e+00> : vector<4x4xf32>
    %117 = tpu.matmul %114, %115, %cst_73 {dimension_numbers = #tpu.dot_dimension_numbers<[1], [1], [0], [0], [0, 0, 1, 0], [], []>} : vector<4x8xf32>, vector<4x8xf32>, vector<4x4xf32> -> vector<4x4xf32>
    %cst_74 = arith.constant 0.353553385 : f32
    %118 = vector.broadcast %cst_74 : f32 to vector<4x4xf32>
    %119 = arith.mulf %117, %118 : vector<4x4xf32>
    %cst_75 = arith.constant dense<0xFF800000> : vector<4xf32>
    %120 = vector.multi_reduction <maximumf>, %119, %cst_75 [1] : vector<4x4xf32> to vector<4xf32>
    %121 = vector.shape_cast %120 : vector<4xf32> to vector<4x1xf32>
    %122 = vector.broadcast %121 : vector<4x1xf32> to vector<4x4xf32>
    %123 = arith.subf %119, %122 : vector<4x4xf32>
    %124 = math.exp %123 : vector<4x4xf32>
    %cst_76 = arith.constant dense<0.000000e+00> : vector<4xf32>
    %125 = vector.multi_reduction <add>, %124, %cst_76 [1] : vector<4x4xf32> to vector<4xf32>
    %126 = vector.shape_cast %125 : vector<4xf32> to vector<4x1xf32>
    %127 = tpu.reciprocal %126 {approx = true} : vector<4x1xf32> -> vector<4x1xf32>
    %128 = vector.broadcast %127 : vector<4x1xf32> to vector<4x4xf32>
    %129 = arith.mulf %124, %128 : vector<4x4xf32>
    %cst_77 = arith.constant dense<0.000000e+00> : vector<4x8xf32>
    %130 = tpu.matmul %129, %116, %cst_77 {dimension_numbers = #tpu.dot_dimension_numbers<[1], [0], [0], [1], [0, 0, 1, 1], [], []>} : vector<4x4xf32>, vector<4x8xf32>, vector<4x8xf32> -> vector<4x8xf32>
    %c4_78 = arith.constant 4 : index
    %c0_79 = arith.constant 0 : index
    %131 = vector.load %arg21[%c4_78, %c0_79] : memref<8x32xf32, #tpu.memory_space<vmem>>, vector<4x8xf32>
    tpu.vector_store %arg21[%c4_78, %c0_79], %130 {strides = array<i32>} : memref<8x32xf32, #tpu.memory_space<vmem>>, vector<4x8xf32>,
    %c4_80 = arith.constant 4 : index
    %c8_81 = arith.constant 8 : index
    %132 = vector.load %arg20[%c4_80, %c8_81] : memref<8x96xf32, #tpu.memory_space<vmem>>, vector<4x8xf32>
    %c4_82 = arith.constant 4 : index
    %c40_83 = arith.constant 40 : index
    %133 = vector.load %arg20[%c4_82, %c40_83] : memref<8x96xf32, #tpu.memory_space<vmem>>, vector<4x8xf32>
    %c4_84 = arith.constant 4 : index
    %c72_85 = arith.constant 72 : index
    %134 = vector.load %arg20[%c4_84, %c72_85] : memref<8x96xf32, #tpu.memory_space<vmem>>, vector<4x8xf32>
    %cst_86 = arith.constant dense<0.000000e+00> : vector<4x4xf32>
    %135 = tpu.matmul %132, %133, %cst_86 {dimension_numbers = #tpu.dot_dimension_numbers<[1], [1], [0], [0], [0, 0, 1, 0], [], []>} : vector<4x8xf32>, vector<4x8xf32>, vector<4x4xf32> -> vector<4x4xf32>
    %cst_87 = arith.constant 0.353553385 : f32
    %136 = vector.broadcast %cst_87 : f32 to vector<4x4xf32>
    %137 = arith.mulf %135, %136 : vector<4x4xf32>
    %cst_88 = arith.constant dense<0xFF800000> : vector<4xf32>
    %138 = vector.multi_reduction <maximumf>, %137, %cst_88 [1] : vector<4x4xf32> to vector<4xf32>
    %139 = vector.shape_cast %138 : vector<4xf32> to vector<4x1xf32>
    %140 = vector.broadcast %139 : vector<4x1xf32> to vector<4x4xf32>
    %141 = arith.subf %137, %140 : vector<4x4xf32>
    %142 = math.exp %141 : vector<4x4xf32>
    %cst_89 = arith.constant dense<0.000000e+00> : vector<4xf32>
    %143 = vector.multi_reduction <add>, %142, %cst_89 [1] : vector<4x4xf32> to vector<4xf32>
    %144 = vector.shape_cast %143 : vector<4xf32> to vector<4x1xf32>
    %145 = tpu.reciprocal %144 {approx = true} : vector<4x1xf32> -> vector<4x1xf32>
    %146 = vector.broadcast %145 : vector<4x1xf32> to vector<4x4xf32>
    %147 = arith.mulf %142, %146 : vector<4x4xf32>
    %cst_90 = arith.constant dense<0.000000e+00> : vector<4x8xf32>
    %148 = tpu.matmul %147, %134, %cst_90 {dimension_numbers = #tpu.dot_dimension_numbers<[1], [0], [0], [1], [0, 0, 1, 1], [], []>} : vector<4x4xf32>, vector<4x8xf32>, vector<4x8xf32> -> vector<4x8xf32>
    %c4_91 = arith.constant 4 : index
    %c8_92 = arith.constant 8 : index
    %149 = vector.load %arg21[%c4_91, %c8_92] : memref<8x32xf32, #tpu.memory_space<vmem>>, vector<4x8xf32>
    tpu.vector_store %arg21[%c4_91, %c8_92], %148 {strides = array<i32>} : memref<8x32xf32, #tpu.memory_space<vmem>>, vector<4x8xf32>,
    %c4_93 = arith.constant 4 : index
    %c16_94 = arith.constant 16 : index
    %150 = vector.load %arg20[%c4_93, %c16_94] : memref<8x96xf32, #tpu.memory_space<vmem>>, vector<4x8xf32>
    %c4_95 = arith.constant 4 : index
    %c48_96 = arith.constant 48 : index
    %151 = vector.load %arg20[%c4_95, %c48_96] : memref<8x96xf32, #tpu.memory_space<vmem>>, vector<4x8xf32>
    %c4_97 = arith.constant 4 : index
    %c80_98 = arith.constant 80 : index
    %152 = vector.load %arg20[%c4_97, %c80_98] : memref<8x96xf32, #tpu.memory_space<vmem>>, vector<4x8xf32>
    %cst_99 = arith.constant dense<0.000000e+00> : vector<4x4xf32>
    %153 = tpu.matmul %150, %151, %cst_99 {dimension_numbers = #tpu.dot_dimension_numbers<[1], [1], [0], [0], [0, 0, 1, 0], [], []>} : vector<4x8xf32>, vector<4x8xf32>, vector<4x4xf32> -> vector<4x4xf32>
    %cst_100 = arith.constant 0.353553385 : f32
    %154 = vector.broadcast %cst_100 : f32 to vector<4x4xf32>
    %155 = arith.mulf %153, %154 : vector<4x4xf32>
    %cst_101 = arith.constant dense<0xFF800000> : vector<4xf32>
    %156 = vector.multi_reduction <maximumf>, %155, %cst_101 [1] : vector<4x4xf32> to vector<4xf32>
    %157 = vector.shape_cast %156 : vector<4xf32> to vector<4x1xf32>
    %158 = vector.broadcast %157 : vector<4x1xf32> to vector<4x4xf32>
    %159 = arith.subf %155, %158 : vector<4x4xf32>
    %160 = math.exp %159 : vector<4x4xf32>
    %cst_102 = arith.constant dense<0.000000e+00> : vector<4xf32>
    %161 = vector.multi_reduction <add>, %160, %cst_102 [1] : vector<4x4xf32> to vector<4xf32>
    %162 = vector.shape_cast %161 : vector<4xf32> to vector<4x1xf32>
    %163 = tpu.reciprocal %162 {approx = true} : vector<4x1xf32> -> vector<4x1xf32>
    %164 = vector.broadcast %163 : vector<4x1xf32> to vector<4x4xf32>
    %165 = arith.mulf %160, %164 : vector<4x4xf32>
    %cst_103 = arith.constant dense<0.000000e+00> : vector<4x8xf32>
    %166 = tpu.matmul %165, %152, %cst_103 {dimension_numbers = #tpu.dot_dimension_numbers<[1], [0], [0], [1], [0, 0, 1, 1], [], []>} : vector<4x4xf32>, vector<4x8xf32>, vector<4x8xf32> -> vector<4x8xf32>
    %c4_104 = arith.constant 4 : index
    %c16_105 = arith.constant 16 : index
    %167 = vector.load %arg21[%c4_104, %c16_105] : memref<8x32xf32, #tpu.memory_space<vmem>>, vector<4x8xf32>
    tpu.vector_store %arg21[%c4_104, %c16_105], %166 {strides = array<i32>} : memref<8x32xf32, #tpu.memory_space<vmem>>, vector<4x8xf32>,
    %c4_106 = arith.constant 4 : index
    %c24_107 = arith.constant 24 : index
    %168 = vector.load %arg20[%c4_106, %c24_107] : memref<8x96xf32, #tpu.memory_space<vmem>>, vector<4x8xf32>
    %c4_108 = arith.constant 4 : index
    %c56_109 = arith.constant 56 : index
    %169 = vector.load %arg20[%c4_108, %c56_109] : memref<8x96xf32, #tpu.memory_space<vmem>>, vector<4x8xf32>
    %c4_110 = arith.constant 4 : index
    %c88_111 = arith.constant 88 : index
    %170 = vector.load %arg20[%c4_110, %c88_111] : memref<8x96xf32, #tpu.memory_space<vmem>>, vector<4x8xf32>
    %cst_112 = arith.constant dense<0.000000e+00> : vector<4x4xf32>
    %171 = tpu.matmul %168, %169, %cst_112 {dimension_numbers = #tpu.dot_dimension_numbers<[1], [1], [0], [0], [0, 0, 1, 0], [], []>} : vector<4x8xf32>, vector<4x8xf32>, vector<4x4xf32> -> vector<4x4xf32>
    %cst_113 = arith.constant 0.353553385 : f32
    %172 = vector.broadcast %cst_113 : f32 to vector<4x4xf32>
    %173 = arith.mulf %171, %172 : vector<4x4xf32>
    %cst_114 = arith.constant dense<0xFF800000> : vector<4xf32>
    %174 = vector.multi_reduction <maximumf>, %173, %cst_114 [1] : vector<4x4xf32> to vector<4xf32>
    %175 = vector.shape_cast %174 : vector<4xf32> to vector<4x1xf32>
    %176 = vector.broadcast %175 : vector<4x1xf32> to vector<4x4xf32>
    %177 = arith.subf %173, %176 : vector<4x4xf32>
    %178 = math.exp %177 : vector<4x4xf32>
    %cst_115 = arith.constant dense<0.000000e+00> : vector<4xf32>
    %179 = vector.multi_reduction <add>, %178, %cst_115 [1] : vector<4x4xf32> to vector<4xf32>
    %180 = vector.shape_cast %179 : vector<4xf32> to vector<4x1xf32>
    %181 = tpu.reciprocal %180 {approx = true} : vector<4x1xf32> -> vector<4x1xf32>
    %182 = vector.broadcast %181 : vector<4x1xf32> to vector<4x4xf32>
    %183 = arith.mulf %178, %182 : vector<4x4xf32>
    %cst_116 = arith.constant dense<0.000000e+00> : vector<4x8xf32>
    %184 = tpu.matmul %183, %170, %cst_116 {dimension_numbers = #tpu.dot_dimension_numbers<[1], [0], [0], [1], [0, 0, 1, 1], [], []>} : vector<4x4xf32>, vector<4x8xf32>, vector<4x8xf32> -> vector<4x8xf32>
    %c4_117 = arith.constant 4 : index
    %c24_118 = arith.constant 24 : index
    %185 = vector.load %arg21[%c4_117, %c24_118] : memref<8x32xf32, #tpu.memory_space<vmem>>, vector<4x8xf32>
    tpu.vector_store %arg21[%c4_117, %c24_118], %184 {strides = array<i32>} : memref<8x32xf32, #tpu.memory_space<vmem>>, vector<4x8xf32>,
    %c0_119 = arith.constant 0 : index
    %c0_120 = arith.constant 0 : index
    %186 = vector.load %arg21[%c0_119, %c0_120] : memref<8x32xf32, #tpu.memory_space<vmem>>, vector<8x32xf32>
    %c0_121 = arith.constant 0 : index
    %c0_122 = arith.constant 0 : index
    %c0_123 = arith.constant 0 : index
    %187 = vector.load %arg9[%c0_121, %c0_122, %c0_123] : memref<2x32x32xf32, #tpu.memory_space<vmem>>, vector<1x32x32xf32>
    %188 = vector.shape_cast %187 : vector<1x32x32xf32> to vector<32x32xf32>
    %cst_124 = arith.constant dense<0.000000e+00> : vector<8x32xf32>
    %189 = tpu.matmul %186, %188, %cst_124 {dimension_numbers = #tpu.dot_dimension_numbers<[1], [0], [0], [1], [0, 0, 1, 1], [], []>} : vector<8x32xf32>, vector<32x32xf32>, vector<8x32xf32> -> vector<8x32xf32>
    %c0_125 = arith.constant 0 : index
    %c0_126 = arith.constant 0 : index
    %c0_127 = arith.constant 0 : index
    %190 = vector.load %arg10[%c0_125, %c0_126, %c0_127] : memref<2x1x32xf32, #tpu.memory_space<vmem>>, vector<1x1x32xf32>
    %191 = vector.shape_cast %190 : vector<1x1x32xf32> to vector<1x32xf32>
    %192 = vector.broadcast %191 : vector<1x32xf32> to vector<8x32xf32>
    %193 = arith.addf %189, %192 : vector<8x32xf32>
    %194 = arith.addf %193, %7 : vector<8x32xf32>
    %c0_128 = arith.constant 0 : index
    %c0_129 = arith.constant 0 : index
    %c0_130 = arith.constant 0 : index
    %195 = vector.load %arg11[%c0_128, %c0_129, %c0_130] : memref<2x1x32xf32, #tpu.memory_space<vmem>>, vector<1x1x32xf32>
    %196 = vector.shape_cast %195 : vector<1x1x32xf32> to vector<1x32xf32>
    %c0_131 = arith.constant 0 : index
    %c0_132 = arith.constant 0 : index
    %c0_133 = arith.constant 0 : index
    %197 = vector.load %arg12[%c0_131, %c0_132, %c0_133] : memref<2x1x32xf32, #tpu.memory_space<vmem>>, vector<1x1x32xf32>
    %198 = vector.shape_cast %197 : vector<1x1x32xf32> to vector<1x32xf32>
    %cst_134 = arith.constant dense<0.000000e+00> : vector<8xf32>
    %199 = vector.multi_reduction <add>, %194, %cst_134 [1] : vector<8x32xf32> to vector<8xf32>
    %200 = vector.shape_cast %199 : vector<8xf32> to vector<8x1xf32>
    %cst_135 = arith.constant 3.200000e+01 : f32
    %201 = vector.broadcast %cst_135 : f32 to vector<8x1xf32>
    %202 = arith.divf %200, %201 : vector<8x1xf32>
    %203 = vector.broadcast %202 : vector<8x1xf32> to vector<8x32xf32>
    %204 = arith.subf %194, %203 : vector<8x32xf32>
    %205 = arith.mulf %204, %204 : vector<8x32xf32>
    %cst_136 = arith.constant dense<0.000000e+00> : vector<8xf32>
    %206 = vector.multi_reduction <add>, %205, %cst_136 [1] : vector<8x32xf32> to vector<8xf32>
    %207 = vector.shape_cast %206 : vector<8xf32> to vector<8x1xf32>
    %cst_137 = arith.constant 3.200000e+01 : f32
    %208 = vector.broadcast %cst_137 : f32 to vector<8x1xf32>
    %209 = arith.divf %207, %208 : vector<8x1xf32>
    %210 = vector.broadcast %202 : vector<8x1xf32> to vector<8x32xf32>
    %211 = arith.subf %194, %210 : vector<8x32xf32>
    %cst_138 = arith.constant 9.99999996E-13 : f32
    %212 = vector.broadcast %cst_138 : f32 to vector<8x1xf32>
    %213 = arith.addf %209, %212 : vector<8x1xf32>
    %214 = math.rsqrt %213 : vector<8x1xf32>
    %215 = vector.broadcast %214 : vector<8x1xf32> to vector<8x32xf32>
    %216 = arith.mulf %211, %215 : vector<8x32xf32>
    %217 = vector.broadcast %196 : vector<1x32xf32> to vector<8x32xf32>
    %218 = arith.mulf %216, %217 : vector<8x32xf32>
    %219 = vector.broadcast %198 : vector<1x32xf32> to vector<8x32xf32>
    %220 = arith.addf %218, %219 : vector<8x32xf32>
    %c0_139 = arith.constant 0 : index
    %c0_140 = arith.constant 0 : index
    %c0_141 = arith.constant 0 : index
    %221 = vector.load %arg13[%c0_139, %c0_140, %c0_141] : memref<2x32x64xf32, #tpu.memory_space<vmem>>, vector<1x32x64xf32>
    %222 = vector.shape_cast %221 : vector<1x32x64xf32> to vector<32x64xf32>
    %cst_142 = arith.constant dense<0.000000e+00> : vector<8x64xf32>
    %223 = tpu.matmul %194, %222, %cst_142 {dimension_numbers = #tpu.dot_dimension_numbers<[1], [0], [0], [1], [0, 0, 1, 1], [], []>} : vector<8x32xf32>, vector<32x64xf32>, vector<8x64xf32> -> vector<8x64xf32>
    %c0_143 = arith.constant 0 : index
    %c0_144 = arith.constant 0 : index
    %c0_145 = arith.constant 0 : index
    %224 = vector.load %arg14[%c0_143, %c0_144, %c0_145] : memref<2x1x64xf32, #tpu.memory_space<vmem>>, vector<1x1x64xf32>
    %225 = vector.shape_cast %224 : vector<1x1x64xf32> to vector<1x64xf32>
    %226 = vector.broadcast %225 : vector<1x64xf32> to vector<8x64xf32>
    %227 = arith.addf %223, %226 : vector<8x64xf32>
    %cst_146 = arith.constant 5.000000e-01 : f32
    %228 = vector.broadcast %cst_146 : f32 to vector<8x64xf32>
    %229 = arith.mulf %228, %227 : vector<8x64xf32>
    %cst_147 = arith.constant 4.471500e-02 : f32
    %230 = vector.broadcast %cst_147 : f32 to vector<8x64xf32>
    %231 = arith.mulf %230, %227 : vector<8x64xf32>
    %232 = arith.mulf %231, %227 : vector<8x64xf32>
    %233 = arith.mulf %232, %227 : vector<8x64xf32>
    %234 = arith.addf %227, %233 : vector<8x64xf32>
    %cst_148 = arith.constant 0.797884583 : f32
    %235 = vector.broadcast %cst_148 : f32 to vector<8x64xf32>
    %236 = arith.mulf %235, %234 : vector<8x64xf32>
    %237 = math.tanh %236 : vector<8x64xf32>
    %cst_149 = arith.constant 1.000000e+00 : f32
    %238 = vector.broadcast %cst_149 : f32 to vector<8x64xf32>
    %239 = arith.addf %238, %237 : vector<8x64xf32>
    %240 = arith.mulf %229, %239 : vector<8x64xf32>
    %c0_150 = arith.constant 0 : index
    %c0_151 = arith.constant 0 : index
    %c0_152 = arith.constant 0 : index
    %241 = vector.load %arg15[%c0_150, %c0_151, %c0_152] : memref<2x64x32xf32, #tpu.memory_space<vmem>>, vector<1x64x32xf32>
    %242 = vector.shape_cast %241 : vector<1x64x32xf32> to vector<64x32xf32>
    %cst_153 = arith.constant dense<0.000000e+00> : vector<8x32xf32>
    %243 = tpu.matmul %240, %242, %cst_153 {dimension_numbers = #tpu.dot_dimension_numbers<[1], [0], [0], [1], [0, 0, 1, 1], [], []>} : vector<8x64xf32>, vector<64x32xf32>, vector<8x32xf32> -> vector<8x32xf32>
    %c0_154 = arith.constant 0 : index
    %c0_155 = arith.constant 0 : index
    %c0_156 = arith.constant 0 : index
    %244 = vector.load %arg16[%c0_154, %c0_155, %c0_156] : memref<2x1x32xf32, #tpu.memory_space<vmem>>, vector<1x1x32xf32>
    %245 = vector.shape_cast %244 : vector<1x1x32xf32> to vector<1x32xf32>
    %246 = vector.broadcast %245 : vector<1x32xf32> to vector<8x32xf32>
    %247 = arith.addf %243, %246 : vector<8x32xf32>
    %248 = arith.addf %247, %220 : vector<8x32xf32>
    %c1 = arith.constant 1 : index
    %c0_157 = arith.constant 0 : index
    %c0_158 = arith.constant 0 : index
    %249 = vector.load %arg5[%c1, %c0_157, %c0_158] : memref<2x1x32xf32, #tpu.memory_space<vmem>>, vector<1x1x32xf32>
    %250 = vector.shape_cast %249 : vector<1x1x32xf32> to vector<1x32xf32>
    %c1_159 = arith.constant 1 : index
    %c0_160 = arith.constant 0 : index
    %c0_161 = arith.constant 0 : index
    %251 = vector.load %arg6[%c1_159, %c0_160, %c0_161] : memref<2x1x32xf32, #tpu.memory_space<vmem>>, vector<1x1x32xf32>
    %252 = vector.shape_cast %251 : vector<1x1x32xf32> to vector<1x32xf32>
    %cst_162 = arith.constant dense<0.000000e+00> : vector<8xf32>
    %253 = vector.multi_reduction <add>, %248, %cst_162 [1] : vector<8x32xf32> to vector<8xf32>
    %254 = vector.shape_cast %253 : vector<8xf32> to vector<8x1xf32>
    %cst_163 = arith.constant 3.200000e+01 : f32
    %255 = vector.broadcast %cst_163 : f32 to vector<8x1xf32>
    %256 = arith.divf %254, %255 : vector<8x1xf32>
    %257 = vector.broadcast %256 : vector<8x1xf32> to vector<8x32xf32>
    %258 = arith.subf %248, %257 : vector<8x32xf32>
    %259 = arith.mulf %258, %258 : vector<8x32xf32>
    %cst_164 = arith.constant dense<0.000000e+00> : vector<8xf32>
    %260 = vector.multi_reduction <add>, %259, %cst_164 [1] : vector<8x32xf32> to vector<8xf32>
    %261 = vector.shape_cast %260 : vector<8xf32> to vector<8x1xf32>
    %cst_165 = arith.constant 3.200000e+01 : f32
    %262 = vector.broadcast %cst_165 : f32 to vector<8x1xf32>
    %263 = arith.divf %261, %262 : vector<8x1xf32>
    %264 = vector.broadcast %256 : vector<8x1xf32> to vector<8x32xf32>
    %265 = arith.subf %248, %264 : vector<8x32xf32>
    %cst_166 = arith.constant 9.99999996E-13 : f32
    %266 = vector.broadcast %cst_166 : f32 to vector<8x1xf32>
    %267 = arith.addf %263, %266 : vector<8x1xf32>
    %268 = math.rsqrt %267 : vector<8x1xf32>
    %269 = vector.broadcast %268 : vector<8x1xf32> to vector<8x32xf32>
    %270 = arith.mulf %265, %269 : vector<8x32xf32>
    %271 = vector.broadcast %250 : vector<1x32xf32> to vector<8x32xf32>
    %272 = arith.mulf %270, %271 : vector<8x32xf32>
    %273 = vector.broadcast %252 : vector<1x32xf32> to vector<8x32xf32>
    %274 = arith.addf %272, %273 : vector<8x32xf32>
    %c1_167 = arith.constant 1 : index
    %c0_168 = arith.constant 0 : index
    %c0_169 = arith.constant 0 : index
    %275 = vector.load %arg7[%c1_167, %c0_168, %c0_169] : memref<2x32x96xf32, #tpu.memory_space<vmem>>, vector<1x32x96xf32>
    %276 = vector.shape_cast %275 : vector<1x32x96xf32> to vector<32x96xf32>
    %cst_170 = arith.constant dense<0.000000e+00> : vector<8x96xf32>
    %277 = tpu.matmul %274, %276, %cst_170 {dimension_numbers = #tpu.dot_dimension_numbers<[1], [0], [0], [1], [0, 0, 1, 1], [], []>} : vector<8x32xf32>, vector<32x96xf32>, vector<8x96xf32> -> vector<8x96xf32>
    %c1_171 = arith.constant 1 : index
    %c0_172 = arith.constant 0 : index
    %c0_173 = arith.constant 0 : index
    %278 = vector.load %arg8[%c1_171, %c0_172, %c0_173] : memref<2x1x96xf32, #tpu.memory_space<vmem>>, vector<1x1x96xf32>
    %279 = vector.shape_cast %278 : vector<1x1x96xf32> to vector<1x96xf32>
    %280 = vector.broadcast %279 : vector<1x96xf32> to vector<8x96xf32>
    %281 = arith.addf %277, %280 : vector<8x96xf32>
    %c0_174 = arith.constant 0 : index
    %c0_175 = arith.constant 0 : index
    %282 = vector.load %arg20[%c0_174, %c0_175] : memref<8x96xf32, #tpu.memory_space<vmem>>, vector<8x96xf32>
    tpu.vector_store %arg20[%c0_174, %c0_175], %281 {strides = array<i32>} : memref<8x96xf32, #tpu.memory_space<vmem>>, vector<8x96xf32>,
    %c0_176 = arith.constant 0 : index
    %c0_177 = arith.constant 0 : index
    %283 = vector.load %arg20[%c0_176, %c0_177] : memref<8x96xf32, #tpu.memory_space<vmem>>, vector<4x8xf32>
    %c0_178 = arith.constant 0 : index
    %c32_179 = arith.constant 32 : index
    %284 = vector.load %arg20[%c0_178, %c32_179] : memref<8x96xf32, #tpu.memory_space<vmem>>, vector<4x8xf32>
    %c0_180 = arith.constant 0 : index
    %c64_181 = arith.constant 64 : index
    %285 = vector.load %arg20[%c0_180, %c64_181] : memref<8x96xf32, #tpu.memory_space<vmem>>, vector<4x8xf32>
    %cst_182 = arith.constant dense<0.000000e+00> : vector<4x4xf32>
    %286 = tpu.matmul %283, %284, %cst_182 {dimension_numbers = #tpu.dot_dimension_numbers<[1], [1], [0], [0], [0, 0, 1, 0], [], []>} : vector<4x8xf32>, vector<4x8xf32>, vector<4x4xf32> -> vector<4x4xf32>
    %cst_183 = arith.constant 0.353553385 : f32
    %287 = vector.broadcast %cst_183 : f32 to vector<4x4xf32>
    %288 = arith.mulf %286, %287 : vector<4x4xf32>
    %cst_184 = arith.constant dense<0xFF800000> : vector<4xf32>
    %289 = vector.multi_reduction <maximumf>, %288, %cst_184 [1] : vector<4x4xf32> to vector<4xf32>
    %290 = vector.shape_cast %289 : vector<4xf32> to vector<4x1xf32>
    %291 = vector.broadcast %290 : vector<4x1xf32> to vector<4x4xf32>
    %292 = arith.subf %288, %291 : vector<4x4xf32>
    %293 = math.exp %292 : vector<4x4xf32>
    %cst_185 = arith.constant dense<0.000000e+00> : vector<4xf32>
    %294 = vector.multi_reduction <add>, %293, %cst_185 [1] : vector<4x4xf32> to vector<4xf32>
    %295 = vector.shape_cast %294 : vector<4xf32> to vector<4x1xf32>
    %296 = tpu.reciprocal %295 {approx = true} : vector<4x1xf32> -> vector<4x1xf32>
    %297 = vector.broadcast %296 : vector<4x1xf32> to vector<4x4xf32>
    %298 = arith.mulf %293, %297 : vector<4x4xf32>
    %cst_186 = arith.constant dense<0.000000e+00> : vector<4x8xf32>
    %299 = tpu.matmul %298, %285, %cst_186 {dimension_numbers = #tpu.dot_dimension_numbers<[1], [0], [0], [1], [0, 0, 1, 1], [], []>} : vector<4x4xf32>, vector<4x8xf32>, vector<4x8xf32> -> vector<4x8xf32>
    %c0_187 = arith.constant 0 : index
    %c0_188 = arith.constant 0 : index
    %300 = vector.load %arg21[%c0_187, %c0_188] : memref<8x32xf32, #tpu.memory_space<vmem>>, vector<4x8xf32>
    tpu.vector_store %arg21[%c0_187, %c0_188], %299 {strides = array<i32>} : memref<8x32xf32, #tpu.memory_space<vmem>>, vector<4x8xf32>,
    %c0_189 = arith.constant 0 : index
    %c8_190 = arith.constant 8 : index
    %301 = vector.load %arg20[%c0_189, %c8_190] : memref<8x96xf32, #tpu.memory_space<vmem>>, vector<4x8xf32>
    %c0_191 = arith.constant 0 : index
    %c40_192 = arith.constant 40 : index
    %302 = vector.load %arg20[%c0_191, %c40_192] : memref<8x96xf32, #tpu.memory_space<vmem>>, vector<4x8xf32>
    %c0_193 = arith.constant 0 : index
    %c72_194 = arith.constant 72 : index
    %303 = vector.load %arg20[%c0_193, %c72_194] : memref<8x96xf32, #tpu.memory_space<vmem>>, vector<4x8xf32>
    %cst_195 = arith.constant dense<0.000000e+00> : vector<4x4xf32>
    %304 = tpu.matmul %301, %302, %cst_195 {dimension_numbers = #tpu.dot_dimension_numbers<[1], [1], [0], [0], [0, 0, 1, 0], [], []>} : vector<4x8xf32>, vector<4x8xf32>, vector<4x4xf32> -> vector<4x4xf32>
    %cst_196 = arith.constant 0.353553385 : f32
    %305 = vector.broadcast %cst_196 : f32 to vector<4x4xf32>
    %306 = arith.mulf %304, %305 : vector<4x4xf32>
    %cst_197 = arith.constant dense<0xFF800000> : vector<4xf32>
    %307 = vector.multi_reduction <maximumf>, %306, %cst_197 [1] : vector<4x4xf32> to vector<4xf32>
    %308 = vector.shape_cast %307 : vector<4xf32> to vector<4x1xf32>
    %309 = vector.broadcast %308 : vector<4x1xf32> to vector<4x4xf32>
    %310 = arith.subf %306, %309 : vector<4x4xf32>
    %311 = math.exp %310 : vector<4x4xf32>
    %cst_198 = arith.constant dense<0.000000e+00> : vector<4xf32>
    %312 = vector.multi_reduction <add>, %311, %cst_198 [1] : vector<4x4xf32> to vector<4xf32>
    %313 = vector.shape_cast %312 : vector<4xf32> to vector<4x1xf32>
    %314 = tpu.reciprocal %313 {approx = true} : vector<4x1xf32> -> vector<4x1xf32>
    %315 = vector.broadcast %314 : vector<4x1xf32> to vector<4x4xf32>
    %316 = arith.mulf %311, %315 : vector<4x4xf32>
    %cst_199 = arith.constant dense<0.000000e+00> : vector<4x8xf32>
    %317 = tpu.matmul %316, %303, %cst_199 {dimension_numbers = #tpu.dot_dimension_numbers<[1], [0], [0], [1], [0, 0, 1, 1], [], []>} : vector<4x4xf32>, vector<4x8xf32>, vector<4x8xf32> -> vector<4x8xf32>
    %c0_200 = arith.constant 0 : index
    %c8_201 = arith.constant 8 : index
    %318 = vector.load %arg21[%c0_200, %c8_201] : memref<8x32xf32, #tpu.memory_space<vmem>>, vector<4x8xf32>
    tpu.vector_store %arg21[%c0_200, %c8_201], %317 {strides = array<i32>} : memref<8x32xf32, #tpu.memory_space<vmem>>, vector<4x8xf32>,
    %c0_202 = arith.constant 0 : index
    %c16_203 = arith.constant 16 : index
    %319 = vector.load %arg20[%c0_202, %c16_203] : memref<8x96xf32, #tpu.memory_space<vmem>>, vector<4x8xf32>
    %c0_204 = arith.constant 0 : index
    %c48_205 = arith.constant 48 : index
    %320 = vector.load %arg20[%c0_204, %c48_205] : memref<8x96xf32, #tpu.memory_space<vmem>>, vector<4x8xf32>
    %c0_206 = arith.constant 0 : index
    %c80_207 = arith.constant 80 : index
    %321 = vector.load %arg20[%c0_206, %c80_207] : memref<8x96xf32, #tpu.memory_space<vmem>>, vector<4x8xf32>
    %cst_208 = arith.constant dense<0.000000e+00> : vector<4x4xf32>
    %322 = tpu.matmul %319, %320, %cst_208 {dimension_numbers = #tpu.dot_dimension_numbers<[1], [1], [0], [0], [0, 0, 1, 0], [], []>} : vector<4x8xf32>, vector<4x8xf32>, vector<4x4xf32> -> vector<4x4xf32>
    %cst_209 = arith.constant 0.353553385 : f32
    %323 = vector.broadcast %cst_209 : f32 to vector<4x4xf32>
    %324 = arith.mulf %322, %323 : vector<4x4xf32>
    %cst_210 = arith.constant dense<0xFF800000> : vector<4xf32>
    %325 = vector.multi_reduction <maximumf>, %324, %cst_210 [1] : vector<4x4xf32> to vector<4xf32>
    %326 = vector.shape_cast %325 : vector<4xf32> to vector<4x1xf32>
    %327 = vector.broadcast %326 : vector<4x1xf32> to vector<4x4xf32>
    %328 = arith.subf %324, %327 : vector<4x4xf32>
    %329 = math.exp %328 : vector<4x4xf32>
    %cst_211 = arith.constant dense<0.000000e+00> : vector<4xf32>
    %330 = vector.multi_reduction <add>, %329, %cst_211 [1] : vector<4x4xf32> to vector<4xf32>
    %331 = vector.shape_cast %330 : vector<4xf32> to vector<4x1xf32>
    %332 = tpu.reciprocal %331 {approx = true} : vector<4x1xf32> -> vector<4x1xf32>
    %333 = vector.broadcast %332 : vector<4x1xf32> to vector<4x4xf32>
    %334 = arith.mulf %329, %333 : vector<4x4xf32>
    %cst_212 = arith.constant dense<0.000000e+00> : vector<4x8xf32>
    %335 = tpu.matmul %334, %321, %cst_212 {dimension_numbers = #tpu.dot_dimension_numbers<[1], [0], [0], [1], [0, 0, 1, 1], [], []>} : vector<4x4xf32>, vector<4x8xf32>, vector<4x8xf32> -> vector<4x8xf32>
    %c0_213 = arith.constant 0 : index
    %c16_214 = arith.constant 16 : index
    %336 = vector.load %arg21[%c0_213, %c16_214] : memref<8x32xf32, #tpu.memory_space<vmem>>, vector<4x8xf32>
    tpu.vector_store %arg21[%c0_213, %c16_214], %335 {strides = array<i32>} : memref<8x32xf32, #tpu.memory_space<vmem>>, vector<4x8xf32>,
    %c0_215 = arith.constant 0 : index
    %c24_216 = arith.constant 24 : index
    %337 = vector.load %arg20[%c0_215, %c24_216] : memref<8x96xf32, #tpu.memory_space<vmem>>, vector<4x8xf32>
    %c0_217 = arith.constant 0 : index
    %c56_218 = arith.constant 56 : index
    %338 = vector.load %arg20[%c0_217, %c56_218] : memref<8x96xf32, #tpu.memory_space<vmem>>, vector<4x8xf32>
    %c0_219 = arith.constant 0 : index
    %c88_220 = arith.constant 88 : index
    %339 = vector.load %arg20[%c0_219, %c88_220] : memref<8x96xf32, #tpu.memory_space<vmem>>, vector<4x8xf32>
    %cst_221 = arith.constant dense<0.000000e+00> : vector<4x4xf32>
    %340 = tpu.matmul %337, %338, %cst_221 {dimension_numbers = #tpu.dot_dimension_numbers<[1], [1], [0], [0], [0, 0, 1, 0], [], []>} : vector<4x8xf32>, vector<4x8xf32>, vector<4x4xf32> -> vector<4x4xf32>
    %cst_222 = arith.constant 0.353553385 : f32
    %341 = vector.broadcast %cst_222 : f32 to vector<4x4xf32>
    %342 = arith.mulf %340, %341 : vector<4x4xf32>
    %cst_223 = arith.constant dense<0xFF800000> : vector<4xf32>
    %343 = vector.multi_reduction <maximumf>, %342, %cst_223 [1] : vector<4x4xf32> to vector<4xf32>
    %344 = vector.shape_cast %343 : vector<4xf32> to vector<4x1xf32>
    %345 = vector.broadcast %344 : vector<4x1xf32> to vector<4x4xf32>
    %346 = arith.subf %342, %345 : vector<4x4xf32>
    %347 = math.exp %346 : vector<4x4xf32>
    %cst_224 = arith.constant dense<0.000000e+00> : vector<4xf32>
    %348 = vector.multi_reduction <add>, %347, %cst_224 [1] : vector<4x4xf32> to vector<4xf32>
    %349 = vector.shape_cast %348 : vector<4xf32> to vector<4x1xf32>
    %350 = tpu.reciprocal %349 {approx = true} : vector<4x1xf32> -> vector<4x1xf32>
    %351 = vector.broadcast %350 : vector<4x1xf32> to vector<4x4xf32>
    %352 = arith.mulf %347, %351 : vector<4x4xf32>
    %cst_225 = arith.constant dense<0.000000e+00> : vector<4x8xf32>
    %353 = tpu.matmul %352, %339, %cst_225 {dimension_numbers = #tpu.dot_dimension_numbers<[1], [0], [0], [1], [0, 0, 1, 1], [], []>} : vector<4x4xf32>, vector<4x8xf32>, vector<4x8xf32> -> vector<4x8xf32>
    %c0_226 = arith.constant 0 : index
    %c24_227 = arith.constant 24 : index
    %354 = vector.load %arg21[%c0_226, %c24_227] : memref<8x32xf32, #tpu.memory_space<vmem>>, vector<4x8xf32>
    tpu.vector_store %arg21[%c0_226, %c24_227], %353 {strides = array<i32>} : memref<8x32xf32, #tpu.memory_space<vmem>>, vector<4x8xf32>,
    %c4_228 = arith.constant 4 : index
    %c0_229 = arith.constant 0 : index
    %355 = vector.load %arg20[%c4_228, %c0_229] : memref<8x96xf32, #tpu.memory_space<vmem>>, vector<4x8xf32>
    %c4_230 = arith.constant 4 : index
    %c32_231 = arith.constant 32 : index
    %356 = vector.load %arg20[%c4_230, %c32_231] : memref<8x96xf32, #tpu.memory_space<vmem>>, vector<4x8xf32>
    %c4_232 = arith.constant 4 : index
    %c64_233 = arith.constant 64 : index
    %357 = vector.load %arg20[%c4_232, %c64_233] : memref<8x96xf32, #tpu.memory_space<vmem>>, vector<4x8xf32>
    %cst_234 = arith.constant dense<0.000000e+00> : vector<4x4xf32>
    %358 = tpu.matmul %355, %356, %cst_234 {dimension_numbers = #tpu.dot_dimension_numbers<[1], [1], [0], [0], [0, 0, 1, 0], [], []>} : vector<4x8xf32>, vector<4x8xf32>, vector<4x4xf32> -> vector<4x4xf32>
    %cst_235 = arith.constant 0.353553385 : f32
    %359 = vector.broadcast %cst_235 : f32 to vector<4x4xf32>
    %360 = arith.mulf %358, %359 : vector<4x4xf32>
    %cst_236 = arith.constant dense<0xFF800000> : vector<4xf32>
    %361 = vector.multi_reduction <maximumf>, %360, %cst_236 [1] : vector<4x4xf32> to vector<4xf32>
    %362 = vector.shape_cast %361 : vector<4xf32> to vector<4x1xf32>
    %363 = vector.broadcast %362 : vector<4x1xf32> to vector<4x4xf32>
    %364 = arith.subf %360, %363 : vector<4x4xf32>
    %365 = math.exp %364 : vector<4x4xf32>
    %cst_237 = arith.constant dense<0.000000e+00> : vector<4xf32>
    %366 = vector.multi_reduction <add>, %365, %cst_237 [1] : vector<4x4xf32> to vector<4xf32>
    %367 = vector.shape_cast %366 : vector<4xf32> to vector<4x1xf32>
    %368 = tpu.reciprocal %367 {approx = true} : vector<4x1xf32> -> vector<4x1xf32>
    %369 = vector.broadcast %368 : vector<4x1xf32> to vector<4x4xf32>
    %370 = arith.mulf %365, %369 : vector<4x4xf32>
    %cst_238 = arith.constant dense<0.000000e+00> : vector<4x8xf32>
    %371 = tpu.matmul %370, %357, %cst_238 {dimension_numbers = #tpu.dot_dimension_numbers<[1], [0], [0], [1], [0, 0, 1, 1], [], []>} : vector<4x4xf32>, vector<4x8xf32>, vector<4x8xf32> -> vector<4x8xf32>
    %c4_239 = arith.constant 4 : index
    %c0_240 = arith.constant 0 : index
    %372 = vector.load %arg21[%c4_239, %c0_240] : memref<8x32xf32, #tpu.memory_space<vmem>>, vector<4x8xf32>
    tpu.vector_store %arg21[%c4_239, %c0_240], %371 {strides = array<i32>} : memref<8x32xf32, #tpu.memory_space<vmem>>, vector<4x8xf32>,
    %c4_241 = arith.constant 4 : index
    %c8_242 = arith.constant 8 : index
    %373 = vector.load %arg20[%c4_241, %c8_242] : memref<8x96xf32, #tpu.memory_space<vmem>>, vector<4x8xf32>
    %c4_243 = arith.constant 4 : index
    %c40_244 = arith.constant 40 : index
    %374 = vector.load %arg20[%c4_243, %c40_244] : memref<8x96xf32, #tpu.memory_space<vmem>>, vector<4x8xf32>
    %c4_245 = arith.constant 4 : index
    %c72_246 = arith.constant 72 : index
    %375 = vector.load %arg20[%c4_245, %c72_246] : memref<8x96xf32, #tpu.memory_space<vmem>>, vector<4x8xf32>
    %cst_247 = arith.constant dense<0.000000e+00> : vector<4x4xf32>
    %376 = tpu.matmul %373, %374, %cst_247 {dimension_numbers = #tpu.dot_dimension_numbers<[1], [1], [0], [0], [0, 0, 1, 0], [], []>} : vector<4x8xf32>, vector<4x8xf32>, vector<4x4xf32> -> vector<4x4xf32>
    %cst_248 = arith.constant 0.353553385 : f32
    %377 = vector.broadcast %cst_248 : f32 to vector<4x4xf32>
    %378 = arith.mulf %376, %377 : vector<4x4xf32>
    %cst_249 = arith.constant dense<0xFF800000> : vector<4xf32>
    %379 = vector.multi_reduction <maximumf>, %378, %cst_249 [1] : vector<4x4xf32> to vector<4xf32>
    %380 = vector.shape_cast %379 : vector<4xf32> to vector<4x1xf32>
    %381 = vector.broadcast %380 : vector<4x1xf32> to vector<4x4xf32>
    %382 = arith.subf %378, %381 : vector<4x4xf32>
    %383 = math.exp %382 : vector<4x4xf32>
    %cst_250 = arith.constant dense<0.000000e+00> : vector<4xf32>
    %384 = vector.multi_reduction <add>, %383, %cst_250 [1] : vector<4x4xf32> to vector<4xf32>
    %385 = vector.shape_cast %384 : vector<4xf32> to vector<4x1xf32>
    %386 = tpu.reciprocal %385 {approx = true} : vector<4x1xf32> -> vector<4x1xf32>
    %387 = vector.broadcast %386 : vector<4x1xf32> to vector<4x4xf32>
    %388 = arith.mulf %383, %387 : vector<4x4xf32>
    %cst_251 = arith.constant dense<0.000000e+00> : vector<4x8xf32>
    %389 = tpu.matmul %388, %375, %cst_251 {dimension_numbers = #tpu.dot_dimension_numbers<[1], [0], [0], [1], [0, 0, 1, 1], [], []>} : vector<4x4xf32>, vector<4x8xf32>, vector<4x8xf32> -> vector<4x8xf32>
    %c4_252 = arith.constant 4 : index
    %c8_253 = arith.constant 8 : index
    %390 = vector.load %arg21[%c4_252, %c8_253] : memref<8x32xf32, #tpu.memory_space<vmem>>, vector<4x8xf32>
    tpu.vector_store %arg21[%c4_252, %c8_253], %389 {strides = array<i32>} : memref<8x32xf32, #tpu.memory_space<vmem>>, vector<4x8xf32>,
    %c4_254 = arith.constant 4 : index
    %c16_255 = arith.constant 16 : index
    %391 = vector.load %arg20[%c4_254, %c16_255] : memref<8x96xf32, #tpu.memory_space<vmem>>, vector<4x8xf32>
    %c4_256 = arith.constant 4 : index
    %c48_257 = arith.constant 48 : index
    %392 = vector.load %arg20[%c4_256, %c48_257] : memref<8x96xf32, #tpu.memory_space<vmem>>, vector<4x8xf32>
    %c4_258 = arith.constant 4 : index
    %c80_259 = arith.constant 80 : index
    %393 = vector.load %arg20[%c4_258, %c80_259] : memref<8x96xf32, #tpu.memory_space<vmem>>, vector<4x8xf32>
    %cst_260 = arith.constant dense<0.000000e+00> : vector<4x4xf32>
    %394 = tpu.matmul %391, %392, %cst_260 {dimension_numbers = #tpu.dot_dimension_numbers<[1], [1], [0], [0], [0, 0, 1, 0], [], []>} : vector<4x8xf32>, vector<4x8xf32>, vector<4x4xf32> -> vector<4x4xf32>
    %cst_261 = arith.constant 0.353553385 : f32
    %395 = vector.broadcast %cst_261 : f32 to vector<4x4xf32>
    %396 = arith.mulf %394, %395 : vector<4x4xf32>
    %cst_262 = arith.constant dense<0xFF800000> : vector<4xf32>
    %397 = vector.multi_reduction <maximumf>, %396, %cst_262 [1] : vector<4x4xf32> to vector<4xf32>
    %398 = vector.shape_cast %397 : vector<4xf32> to vector<4x1xf32>
    %399 = vector.broadcast %398 : vector<4x1xf32> to vector<4x4xf32>
    %400 = arith.subf %396, %399 : vector<4x4xf32>
    %401 = math.exp %400 : vector<4x4xf32>
    %cst_263 = arith.constant dense<0.000000e+00> : vector<4xf32>
    %402 = vector.multi_reduction <add>, %401, %cst_263 [1] : vector<4x4xf32> to vector<4xf32>
    %403 = vector.shape_cast %402 : vector<4xf32> to vector<4x1xf32>
    %404 = tpu.reciprocal %403 {approx = true} : vector<4x1xf32> -> vector<4x1xf32>
    %405 = vector.broadcast %404 : vector<4x1xf32> to vector<4x4xf32>
    %406 = arith.mulf %401, %405 : vector<4x4xf32>
    %cst_264 = arith.constant dense<0.000000e+00> : vector<4x8xf32>
    %407 = tpu.matmul %406, %393, %cst_264 {dimension_numbers = #tpu.dot_dimension_numbers<[1], [0], [0], [1], [0, 0, 1, 1], [], []>} : vector<4x4xf32>, vector<4x8xf32>, vector<4x8xf32> -> vector<4x8xf32>
    %c4_265 = arith.constant 4 : index
    %c16_266 = arith.constant 16 : index
    %408 = vector.load %arg21[%c4_265, %c16_266] : memref<8x32xf32, #tpu.memory_space<vmem>>, vector<4x8xf32>
    tpu.vector_store %arg21[%c4_265, %c16_266], %407 {strides = array<i32>} : memref<8x32xf32, #tpu.memory_space<vmem>>, vector<4x8xf32>,
    %c4_267 = arith.constant 4 : index
    %c24_268 = arith.constant 24 : index
    %409 = vector.load %arg20[%c4_267, %c24_268] : memref<8x96xf32, #tpu.memory_space<vmem>>, vector<4x8xf32>
    %c4_269 = arith.constant 4 : index
    %c56_270 = arith.constant 56 : index
    %410 = vector.load %arg20[%c4_269, %c56_270] : memref<8x96xf32, #tpu.memory_space<vmem>>, vector<4x8xf32>
    %c4_271 = arith.constant 4 : index
    %c88_272 = arith.constant 88 : index
    %411 = vector.load %arg20[%c4_271, %c88_272] : memref<8x96xf32, #tpu.memory_space<vmem>>, vector<4x8xf32>
    %cst_273 = arith.constant dense<0.000000e+00> : vector<4x4xf32>
    %412 = tpu.matmul %409, %410, %cst_273 {dimension_numbers = #tpu.dot_dimension_numbers<[1], [1], [0], [0], [0, 0, 1, 0], [], []>} : vector<4x8xf32>, vector<4x8xf32>, vector<4x4xf32> -> vector<4x4xf32>
    %cst_274 = arith.constant 0.353553385 : f32
    %413 = vector.broadcast %cst_274 : f32 to vector<4x4xf32>
    %414 = arith.mulf %412, %413 : vector<4x4xf32>
    %cst_275 = arith.constant dense<0xFF800000> : vector<4xf32>
    %415 = vector.multi_reduction <maximumf>, %414, %cst_275 [1] : vector<4x4xf32> to vector<4xf32>
    %416 = vector.shape_cast %415 : vector<4xf32> to vector<4x1xf32>
    %417 = vector.broadcast %416 : vector<4x1xf32> to vector<4x4xf32>
    %418 = arith.subf %414, %417 : vector<4x4xf32>
    %419 = math.exp %418 : vector<4x4xf32>
    %cst_276 = arith.constant dense<0.000000e+00> : vector<4xf32>
    %420 = vector.multi_reduction <add>, %419, %cst_276 [1] : vector<4x4xf32> to vector<4xf32>
    %421 = vector.shape_cast %420 : vector<4xf32> to vector<4x1xf32>
    %422 = tpu.reciprocal %421 {approx = true} : vector<4x1xf32> -> vector<4x1xf32>
    %423 = vector.broadcast %422 : vector<4x1xf32> to vector<4x4xf32>
    %424 = arith.mulf %419, %423 : vector<4x4xf32>
    %cst_277 = arith.constant dense<0.000000e+00> : vector<4x8xf32>
    %425 = tpu.matmul %424, %411, %cst_277 {dimension_numbers = #tpu.dot_dimension_numbers<[1], [0], [0], [1], [0, 0, 1, 1], [], []>} : vector<4x4xf32>, vector<4x8xf32>, vector<4x8xf32> -> vector<4x8xf32>
    %c4_278 = arith.constant 4 : index
    %c24_279 = arith.constant 24 : index
    %426 = vector.load %arg21[%c4_278, %c24_279] : memref<8x32xf32, #tpu.memory_space<vmem>>, vector<4x8xf32>
    tpu.vector_store %arg21[%c4_278, %c24_279], %425 {strides = array<i32>} : memref<8x32xf32, #tpu.memory_space<vmem>>, vector<4x8xf32>,
    %c0_280 = arith.constant 0 : index
    %c0_281 = arith.constant 0 : index
    %427 = vector.load %arg21[%c0_280, %c0_281] : memref<8x32xf32, #tpu.memory_space<vmem>>, vector<8x32xf32>
    %c1_282 = arith.constant 1 : index
    %c0_283 = arith.constant 0 : index
    %c0_284 = arith.constant 0 : index
    %428 = vector.load %arg9[%c1_282, %c0_283, %c0_284] : memref<2x32x32xf32, #tpu.memory_space<vmem>>, vector<1x32x32xf32>
    %429 = vector.shape_cast %428 : vector<1x32x32xf32> to vector<32x32xf32>
    %cst_285 = arith.constant dense<0.000000e+00> : vector<8x32xf32>
    %430 = tpu.matmul %427, %429, %cst_285 {dimension_numbers = #tpu.dot_dimension_numbers<[1], [0], [0], [1], [0, 0, 1, 1], [], []>} : vector<8x32xf32>, vector<32x32xf32>, vector<8x32xf32> -> vector<8x32xf32>
    %c1_286 = arith.constant 1 : index
    %c0_287 = arith.constant 0 : index
    %c0_288 = arith.constant 0 : index
    %431 = vector.load %arg10[%c1_286, %c0_287, %c0_288] : memref<2x1x32xf32, #tpu.memory_space<vmem>>, vector<1x1x32xf32>
    %432 = vector.shape_cast %431 : vector<1x1x32xf32> to vector<1x32xf32>
    %433 = vector.broadcast %432 : vector<1x32xf32> to vector<8x32xf32>
    %434 = arith.addf %430, %433 : vector<8x32xf32>
    %435 = arith.addf %434, %248 : vector<8x32xf32>
    %c1_289 = arith.constant 1 : index
    %c0_290 = arith.constant 0 : index
    %c0_291 = arith.constant 0 : index
    %436 = vector.load %arg11[%c1_289, %c0_290, %c0_291] : memref<2x1x32xf32, #tpu.memory_space<vmem>>, vector<1x1x32xf32>
    %437 = vector.shape_cast %436 : vector<1x1x32xf32> to vector<1x32xf32>
    %c1_292 = arith.constant 1 : index
    %c0_293 = arith.constant 0 : index
    %c0_294 = arith.constant 0 : index
    %438 = vector.load %arg12[%c1_292, %c0_293, %c0_294] : memref<2x1x32xf32, #tpu.memory_space<vmem>>, vector<1x1x32xf32>
    %439 = vector.shape_cast %438 : vector<1x1x32xf32> to vector<1x32xf32>
    %cst_295 = arith.constant dense<0.000000e+00> : vector<8xf32>
    %440 = vector.multi_reduction <add>, %435, %cst_295 [1] : vector<8x32xf32> to vector<8xf32>
    %441 = vector.shape_cast %440 : vector<8xf32> to vector<8x1xf32>
    %cst_296 = arith.constant 3.200000e+01 : f32
    %442 = vector.broadcast %cst_296 : f32 to vector<8x1xf32>
    %443 = arith.divf %441, %442 : vector<8x1xf32>
    %444 = vector.broadcast %443 : vector<8x1xf32> to vector<8x32xf32>
    %445 = arith.subf %435, %444 : vector<8x32xf32>
    %446 = arith.mulf %445, %445 : vector<8x32xf32>
    %cst_297 = arith.constant dense<0.000000e+00> : vector<8xf32>
    %447 = vector.multi_reduction <add>, %446, %cst_297 [1] : vector<8x32xf32> to vector<8xf32>
    %448 = vector.shape_cast %447 : vector<8xf32> to vector<8x1xf32>
    %cst_298 = arith.constant 3.200000e+01 : f32
    %449 = vector.broadcast %cst_298 : f32 to vector<8x1xf32>
    %450 = arith.divf %448, %449 : vector<8x1xf32>
    %451 = vector.broadcast %443 : vector<8x1xf32> to vector<8x32xf32>
    %452 = arith.subf %435, %451 : vector<8x32xf32>
    %cst_299 = arith.constant 9.99999996E-13 : f32
    %453 = vector.broadcast %cst_299 : f32 to vector<8x1xf32>
    %454 = arith.addf %450, %453 : vector<8x1xf32>
    %455 = math.rsqrt %454 : vector<8x1xf32>
    %456 = vector.broadcast %455 : vector<8x1xf32> to vector<8x32xf32>
    %457 = arith.mulf %452, %456 : vector<8x32xf32>
    %458 = vector.broadcast %437 : vector<1x32xf32> to vector<8x32xf32>
    %459 = arith.mulf %457, %458 : vector<8x32xf32>
    %460 = vector.broadcast %439 : vector<1x32xf32> to vector<8x32xf32>
    %461 = arith.addf %459, %460 : vector<8x32xf32>
    %c1_300 = arith.constant 1 : index
    %c0_301 = arith.constant 0 : index
    %c0_302 = arith.constant 0 : index
    %462 = vector.load %arg13[%c1_300, %c0_301, %c0_302] : memref<2x32x64xf32, #tpu.memory_space<vmem>>, vector<1x32x64xf32>
    %463 = vector.shape_cast %462 : vector<1x32x64xf32> to vector<32x64xf32>
    %cst_303 = arith.constant dense<0.000000e+00> : vector<8x64xf32>
    %464 = tpu.matmul %435, %463, %cst_303 {dimension_numbers = #tpu.dot_dimension_numbers<[1], [0], [0], [1], [0, 0, 1, 1], [], []>} : vector<8x32xf32>, vector<32x64xf32>, vector<8x64xf32> -> vector<8x64xf32>
    %c1_304 = arith.constant 1 : index
    %c0_305 = arith.constant 0 : index
    %c0_306 = arith.constant 0 : index
    %465 = vector.load %arg14[%c1_304, %c0_305, %c0_306] : memref<2x1x64xf32, #tpu.memory_space<vmem>>, vector<1x1x64xf32>
    %466 = vector.shape_cast %465 : vector<1x1x64xf32> to vector<1x64xf32>
    %467 = vector.broadcast %466 : vector<1x64xf32> to vector<8x64xf32>
    %468 = arith.addf %464, %467 : vector<8x64xf32>
    %cst_307 = arith.constant 5.000000e-01 : f32
    %469 = vector.broadcast %cst_307 : f32 to vector<8x64xf32>
    %470 = arith.mulf %469, %468 : vector<8x64xf32>
    %cst_308 = arith.constant 4.471500e-02 : f32
    %471 = vector.broadcast %cst_308 : f32 to vector<8x64xf32>
    %472 = arith.mulf %471, %468 : vector<8x64xf32>
    %473 = arith.mulf %472, %468 : vector<8x64xf32>
    %474 = arith.mulf %473, %468 : vector<8x64xf32>
    %475 = arith.addf %468, %474 : vector<8x64xf32>
    %cst_309 = arith.constant 0.797884583 : f32
    %476 = vector.broadcast %cst_309 : f32 to vector<8x64xf32>
    %477 = arith.mulf %476, %475 : vector<8x64xf32>
    %478 = math.tanh %477 : vector<8x64xf32>
    %cst_310 = arith.constant 1.000000e+00 : f32
    %479 = vector.broadcast %cst_310 : f32 to vector<8x64xf32>
    %480 = arith.addf %479, %478 : vector<8x64xf32>
    %481 = arith.mulf %470, %480 : vector<8x64xf32>
    %c1_311 = arith.constant 1 : index
    %c0_312 = arith.constant 0 : index
    %c0_313 = arith.constant 0 : index
    %482 = vector.load %arg15[%c1_311, %c0_312, %c0_313] : memref<2x64x32xf32, #tpu.memory_space<vmem>>, vector<1x64x32xf32>
    %483 = vector.shape_cast %482 : vector<1x64x32xf32> to vector<64x32xf32>
    %cst_314 = arith.constant dense<0.000000e+00> : vector<8x32xf32>
    %484 = tpu.matmul %481, %483, %cst_314 {dimension_numbers = #tpu.dot_dimension_numbers<[1], [0], [0], [1], [0, 0, 1, 1], [], []>} : vector<8x64xf32>, vector<64x32xf32>, vector<8x32xf32> -> vector<8x32xf32>
    %c1_315 = arith.constant 1 : index
    %c0_316 = arith.constant 0 : index
    %c0_317 = arith.constant 0 : index
    %485 = vector.load %arg16[%c1_315, %c0_316, %c0_317] : memref<2x1x32xf32, #tpu.memory_space<vmem>>, vector<1x1x32xf32>
    %486 = vector.shape_cast %485 : vector<1x1x32xf32> to vector<1x32xf32>
    %487 = vector.broadcast %486 : vector<1x32xf32> to vector<8x32xf32>
    %488 = arith.addf %484, %487 : vector<8x32xf32>
    %489 = arith.addf %488, %461 : vector<8x32xf32>
    %c0_318 = arith.constant 0 : index
    %c0_319 = arith.constant 0 : index
    %490 = vector.load %arg17[%c0_318, %c0_319] : memref<1x32xf32, #tpu.memory_space<vmem>>, vector<1x32xf32>
    %c0_320 = arith.constant 0 : index
    %c0_321 = arith.constant 0 : index
    %491 = vector.load %arg18[%c0_320, %c0_321] : memref<1x32xf32, #tpu.memory_space<vmem>>, vector<1x32xf32>
    %cst_322 = arith.constant dense<0.000000e+00> : vector<8xf32>
    %492 = vector.multi_reduction <add>, %489, %cst_322 [1] : vector<8x32xf32> to vector<8xf32>
    %493 = vector.shape_cast %492 : vector<8xf32> to vector<8x1xf32>
    %cst_323 = arith.constant 3.200000e+01 : f32
    %494 = vector.broadcast %cst_323 : f32 to vector<8x1xf32>
    %495 = arith.divf %493, %494 : vector<8x1xf32>
    %496 = vector.broadcast %495 : vector<8x1xf32> to vector<8x32xf32>
    %497 = arith.subf %489, %496 : vector<8x32xf32>
    %498 = arith.mulf %497, %497 : vector<8x32xf32>
    %cst_324 = arith.constant dense<0.000000e+00> : vector<8xf32>
    %499 = vector.multi_reduction <add>, %498, %cst_324 [1] : vector<8x32xf32> to vector<8xf32>
    %500 = vector.shape_cast %499 : vector<8xf32> to vector<8x1xf32>
    %cst_325 = arith.constant 3.200000e+01 : f32
    %501 = vector.broadcast %cst_325 : f32 to vector<8x1xf32>
    %502 = arith.divf %500, %501 : vector<8x1xf32>
    %503 = vector.broadcast %495 : vector<8x1xf32> to vector<8x32xf32>
    %504 = arith.subf %489, %503 : vector<8x32xf32>
    %cst_326 = arith.constant 9.99999996E-13 : f32
    %505 = vector.broadcast %cst_326 : f32 to vector<8x1xf32>
    %506 = arith.addf %502, %505 : vector<8x1xf32>
    %507 = math.rsqrt %506 : vector<8x1xf32>
    %508 = vector.broadcast %507 : vector<8x1xf32> to vector<8x32xf32>
    %509 = arith.mulf %504, %508 : vector<8x32xf32>
    %510 = vector.broadcast %490 : vector<1x32xf32> to vector<8x32xf32>
    %511 = arith.mulf %509, %510 : vector<8x32xf32>
    %512 = vector.broadcast %491 : vector<1x32xf32> to vector<8x32xf32>
    %513 = arith.addf %511, %512 : vector<8x32xf32>
    %c0_327 = arith.constant 0 : index
    %c0_328 = arith.constant 0 : index
    %514 = vector.load %arg19[%c0_327, %c0_328] : memref<8x32xf32, #tpu.memory_space<vmem>>, vector<8x32xf32>
    tpu.vector_store %arg19[%c0_327, %c0_328], %513 {strides = array<i32>} : memref<8x32xf32, #tpu.memory_space<vmem>>, vector<8x32xf32>,
    return
  }
  func.func @transform_0(%arg0: i32) -> (i32, i32) {
    %c0_i32 = arith.constant 0 : i32
    %c0_i32_0 = arith.constant 0 : i32
    %c0_i32_1 = arith.constant 0 : i32
    return %c0_i32, %c0_i32_0 : i32, i32
  }
  func.func @transform_1(%arg0: i32) -> (i32, i32) {
    %c0_i32 = arith.constant 0 : i32
    %c0_i32_0 = arith.constant 0 : i32
    %c0_i32_1 = arith.constant 0 : i32
    return %c0_i32, %c0_i32_0 : i32, i32
  }
  func.func @transform_2(%arg0: i32) -> (i32, i32) {
    %c0_i32 = arith.constant 0 : i32
    %c0_i32_0 = arith.constant 0 : i32
    %c0_i32_1 = arith.constant 0 : i32
    return %c0_i32, %c0_i32_0 : i32, i32
  }
  func.func @transform_3(%arg0: i32) -> (i32, i32) {
    %c0_i32 = arith.constant 0 : i32
    %c0_i32_0 = arith.constant 0 : i32
    %c0_i32_1 = arith.constant 0 : i32
    return %c0_i32, %c0_i32_0 : i32, i32
  }
  func.func @transform_4(%arg0: i32) -> (i32, i32, i32) {
    %c0_i32 = arith.constant 0 : i32
    %c0_i32_0 = arith.constant 0 : i32
    %c0_i32_1 = arith.constant 0 : i32
    %c0_i32_2 = arith.constant 0 : i32
    return %c0_i32, %c0_i32_0, %c0_i32_1 : i32, i32, i32
  }
  func.func @transform_5(%arg0: i32) -> (i32, i32, i32) {
    %c0_i32 = arith.constant 0 : i32
    %c0_i32_0 = arith.constant 0 : i32
    %c0_i32_1 = arith.constant 0 : i32
    %c0_i32_2 = arith.constant 0 : i32
    return %c0_i32, %c0_i32_0, %c0_i32_1 : i32, i32, i32
  }
  func.func @transform_6(%arg0: i32) -> (i32, i32, i32) {
    %c0_i32 = arith.constant 0 : i32
    %c0_i32_0 = arith.constant 0 : i32
    %c0_i32_1 = arith.constant 0 : i32
    %c0_i32_2 = arith.constant 0 : i32
    return %c0_i32, %c0_i32_0, %c0_i32_1 : i32, i32, i32
  }
  func.func @transform_7(%arg0: i32) -> (i32, i32, i32) {
    %c0_i32 = arith.constant 0 : i32
    %c0_i32_0 = arith.constant 0 : i32
    %c0_i32_1 = arith.constant 0 : i32
    %c0_i32_2 = arith.constant 0 : i32
    return %c0_i32, %c0_i32_0, %c0_i32_1 : i32, i32, i32
  }
  func.func @transform_8(%arg0: i32) -> (i32, i32, i32) {
    %c0_i32 = arith.constant 0 : i32
    %c0_i32_0 = arith.constant 0 : i32
    %c0_i32_1 = arith.constant 0 : i32
    %c0_i32_2 = arith.constant 0 : i32
    return %c0_i32, %c0_i32_0, %c0_i32_1 : i32, i32, i32
  }
  func.func @transform_9(%arg0: i32) -> (i32, i32, i32) {
    %c0_i32 = arith.constant 0 : i32
    %c0_i32_0 = arith.constant 0 : i32
    %c0_i32_1 = arith.constant 0 : i32
    %c0_i32_2 = arith.constant 0 : i32
    return %c0_i32, %c0_i32_0, %c0_i32_1 : i32, i32, i32
  }
  func.func @transform_10(%arg0: i32) -> (i32, i32, i32) {
    %c0_i32 = arith.constant 0 : i32
    %c0_i32_0 = arith.constant 0 : i32
    %c0_i32_1 = arith.constant 0 : i32
    %c0_i32_2 = arith.constant 0 : i32
    return %c0_i32, %c0_i32_0, %c0_i32_1 : i32, i32, i32
  }
  func.func @transform_11(%arg0: i32) -> (i32, i32, i32) {
    %c0_i32 = arith.constant 0 : i32
    %c0_i32_0 = arith.constant 0 : i32
    %c0_i32_1 = arith.constant 0 : i32
    %c0_i32_2 = arith.constant 0 : i32
    return %c0_i32, %c0_i32_0, %c0_i32_1 : i32, i32, i32
  }
  func.func @transform_12(%arg0: i32) -> (i32, i32, i32) {
    %c0_i32 = arith.constant 0 : i32
    %c0_i32_0 = arith.constant 0 : i32
    %c0_i32_1 = arith.constant 0 : i32
    %c0_i32_2 = arith.constant 0 : i32
    return %c0_i32, %c0_i32_0, %c0_i32_1 : i32, i32, i32
  }
  func.func @transform_13(%arg0: i32) -> (i32, i32, i32) {
    %c0_i32 = arith.constant 0 : i32
    %c0_i32_0 = arith.constant 0 : i32
    %c0_i32_1 = arith.constant 0 : i32
    %c0_i32_2 = arith.constant 0 : i32
    return %c0_i32, %c0_i32_0, %c0_i32_1 : i32, i32, i32
  }
  func.func @transform_14(%arg0: i32) -> (i32, i32, i32) {
    %c0_i32 = arith.constant 0 : i32
    %c0_i32_0 = arith.constant 0 : i32
    %c0_i32_1 = arith.constant 0 : i32
    %c0_i32_2 = arith.constant 0 : i32
    return %c0_i32, %c0_i32_0, %c0_i32_1 : i32, i32, i32
  }
  func.func @transform_15(%arg0: i32) -> (i32, i32, i32) {
    %c0_i32 = arith.constant 0 : i32
    %c0_i32_0 = arith.constant 0 : i32
    %c0_i32_1 = arith.constant 0 : i32
    %c0_i32_2 = arith.constant 0 : i32
    return %c0_i32, %c0_i32_0, %c0_i32_1 : i32, i32, i32
  }
  func.func @transform_16(%arg0: i32) -> (i32, i32) {
    %c0_i32 = arith.constant 0 : i32
    %c0_i32_0 = arith.constant 0 : i32
    %c0_i32_1 = arith.constant 0 : i32
    return %c0_i32, %c0_i32_0 : i32, i32
  }
  func.func @transform_17(%arg0: i32) -> (i32, i32) {
    %c0_i32 = arith.constant 0 : i32
    %c0_i32_0 = arith.constant 0 : i32
    %c0_i32_1 = arith.constant 0 : i32
    return %c0_i32, %c0_i32_0 : i32, i32
  }
  func.func @transform_18(%arg0: i32) -> (i32, i32) {
    %c0_i32 = arith.constant 0 : i32
    %c0_i32_0 = arith.constant 0 : i32
    %c0_i32_1 = arith.constant 0 : i32
    return %c0_i32, %c0_i32_0 : i32, i32
  }
}

</mosaic_0001>

<bundles_post_ra>
// kernel: siglip_visual_forward.1
= control target key start
LH: loop header
LB: loop body
LE: loop exit
PB: predicated region body
PF: predicated region fallthrough
CT: control target
= control target key end

     0   :  { %s5265_s0 = inlined_call_operand.vmem [shape: f32[8,192], index: 0, kind: input, shape index: {}]   ;;  %s5266_s1 = inlined_call_operand.vmem [shape: f32[192,32], index: 1, kind: input, shape index: {}]   ;;  %s5267_s2 = inlined_call_operand.vmem [shape: f32[1,32], index: 2, kind: input, shape index: {}]   ;;  %s5268_s3 = inlined_call_operand.vmem [shape: f32[8,32], index: 3, kind: input, shape index: {}]   ;;  %s5269_s4 = inlined_call_operand.vmem [shape: f32[2,1,32], index: 4, kind: input, shape index: {}]   ;;  %s5270_s5 = inlined_call_operand.vmem [shape: f32[2,1,32], index: 5, kind: input, shape index: {}]   ;;  %s5271_s6 = inlined_call_operand.vmem [shape: f32[2,32,96], index: 6, kind: input, shape index: {}]   ;;  %s5272_s7 = inlined_call_operand.vmem [shape: f32[2,1,96], index: 7, kind: input, shape index: {}]   ;;  %s5273_s8 = inlined_call_operand.vmem [shape: f32[2,32,32], index: 8, kind: input, shape index: {}]   ;;  %s5274_s9 = inlined_call_operand.vmem [shape: f32[2,1,32], index: 9, kind: input, shape index: {}]   ;;  %s5275_s10 = inlined_call_operand.vmem [shape: f32[2,1,32], index: 10, kind: input, shape index: {}]   ;;  %s5276_s11 = inlined_call_operand.vmem [shape: f32[2,1,32], index: 11, kind: input, shape index: {}]   ;;  %s5277_s12 = inlined_call_operand.vmem [shape: f32[2,32,64], index: 12, kind: input, shape index: {}]   ;;  %s5278_s13 = inlined_call_operand.vmem [shape: f32[2,1,64], index: 13, kind: input, shape index: {}]   ;;  %s5279_s14 = inlined_call_operand.vmem [shape: f32[2,64,32], index: 14, kind: input, shape index: {}]   ;;  %s5280_s15 = inlined_call_operand.vmem [shape: f32[2,1,32], index: 15, kind: input, shape index: {}]   ;;  %s5281_s16 = inlined_call_operand.vmem [shape: f32[1,32], index: 16, kind: input, shape index: {}]   ;;  %s5282_s17 = inlined_call_operand.vmem [shape: f32[1,32], index: 17, kind: input, shape index: {}]   ;;  %s5283_s18 = inlined_call_operand.hbm [shape: f32[8,32], index: 18, kind: output, shape index: {}]  }
   0x1   :  { %5298 = sst [smem:[#allocation7_spill]] %s5265_s0 }
   0x2   :  { %5299 = sst [smem:[#allocation8_spill]] %s5266_s1 }
   0x3   :  { %5300 = sst [smem:[#allocation9_spill]] %s5267_s2 }
   0x4   :  { %s5301_s29 = sld [smem:[#allocation8_spill]]  ;;  %v4431_v1 = vmov 0.0   ;;  %vm93_vm0 = vcmask 523264  }
   0x5   :  { %97 = vmatprep.subr.mxu0 %v4431_v1  ;;  %4050 = vmatprep.subr.mxu1 %v4431_v1  ;;  %s5302_s25 = sld [smem:[#allocation7_spill]] }
   0xa   :  { %v77_v0 = vld [vmem:[%s5301_s29 + $0x78] sm:$0xff]  ;;  %v76_v2 = vld [vmem:[%s5301_s29 + $0x70] sm:$0xff]  ;;  %v75_v3 = vld [vmem:[%s5301_s29 + $0x68] sm:$0xff] }
   0xb   :  { %98 = vmatpush1.msra.mxu0 %v77_v0  ;;  %v74_v4 = vld [vmem:[%s5301_s29 + $0x60] sm:$0xff]  ;;  %v73_v5 = vld [vmem:[%s5301_s29 + $0x58] sm:$0xff]  ;;  %v61_v6 = vld [vmem:[%s5302_s25 + $0x8] sm:$0xff] }
   0xc   :  { %99 = vmatprep.subr.mxu0 %v4431_v1  ;;  %v72_v7 = vld [vmem:[%s5301_s29 + $0x50] sm:$0xff]  ;;  %3819 = vmatprep.mubr.msk.f32.mxu0 %vm93_vm0, %v61_v6 }
   0xd   :  { %100 = vmatpush1.msra.mxu0 %v76_v2 }
   0xe   :  { %101 = vmatprep.subr.mxu0 %v4431_v1 }
   0xf   :  { %102 = vmatpush1.msra.mxu0 %v75_v3 }
  0x10   :  { %103 = vmatprep.subr.mxu0 %v4431_v1 }
  0x11   :  { %104 = vmatpush1.msra.mxu0 %v74_v4 }
  0x12   :  { %105 = vmatprep.subr.mxu0 %v4431_v1 }
  0x13   :  { %23 = vsyncpa [#allocation5], 0  ;;  %106 = vmatpush1.msra.mxu0 %v73_v5  ;;  %v71_v8 = vld [vmem:[%s5301_s29 + $0x48] sm:$0xff]  ;;  %v70_v9 = vld [vmem:[%s5301_s29 + $0x40] sm:$0xff]  ;;  %s5303_s30 = sld [smem:[#allocation9_spill]]  ;;  %vm171_vm1 = vcmask 261120  }
  0x14   :  { %107 = vmatprep.subr.mxu0 %v4431_v1  ;;  %v69_v10 = vld [vmem:[%s5301_s29 + $0x38] sm:$0xff]  ;;  %v68_v11 = vld [vmem:[%s5301_s29 + $0x30] sm:$0xff]  ;;  %v67_v12 = vld [vmem:[%s5301_s29 + $0x28] sm:$0xff]  ;;  %vm4432_vm2 = vmmov 0   ;;  %vm284_vm3 = vcmask 785408   ;;  %s5292_s0 = smov 64  }
  0x15   :  { %108 = vmatpush1.msra.mxu0 %v72_v7  ;;  %v66_v13 = vld [vmem:[%s5301_s29 + $0x20] sm:$0xff]  ;;  %v65_v14 = vld [vmem:[%s5301_s29 + $0x18] sm:$0xff]  ;;  %v64_v15 = vld [vmem:[%s5301_s29 + $0x10] sm:$0xff]  ;;  %4058 = vmatprep.mubr.msk.f32.mxu1 %vm4432_vm2, %v4431_v1  ;;  %s4434_s19 = smov 96   ;;  %vm290_vm4 = vcmask 64512   ;;  %vm384_vm5 = vcmask 1043456  }
  0x16   :  { %109 = vmatprep.subr.mxu0 %v4431_v1  ;;  %v63_v16 = vld [vmem:[%s5301_s29 + $0x8] sm:$0xff]  ;;  %v62_v17 = vld [vmem:[%s5301_s29] sm:$0xff]  ;;  %v85_v18 = vld [vmem:[%s5301_s29 + $0xb8] sm:$0xff]  ;;  %vm366_vm6 = vcmask 27648   ;;  %vm380_vm7 = vcmask 31744   ;;  %vm457_vm8 = vcmask 60416  }
  0x17   :  { %110 = vmatpush1.msra.mxu0 %v71_v8  ;;  %v84_v19 = vld [vmem:[%s5301_s29 + $0xb0] sm:$0xff]  ;;  %v83_v20 = vld [vmem:[%s5301_s29 + $0xa8] sm:$0xff]  ;;  %v82_v21 = vld [vmem:[%s5301_s29 + $0xa0] sm:$0xff]  ;;  %s4438_s1 = smov 80   ;;  %s4439_s20 = smov 112   ;;  %vm632_vm9 = vcmask 126016  }
  0x18   :  { %111 = vmatprep.subr.mxu0 %v4431_v1  ;;  %v81_v22 = vld [vmem:[%s5301_s29 + $0x98] sm:$0xff]  ;;  %v80_v23 = vld [vmem:[%s5301_s29 + $0x90] sm:$0xff]  ;;  %v79_v24 = vld [vmem:[%s5301_s29 + $0x88] sm:$0xff]  ;;  %s5290_s21 = smov 48   ;;  %s4441_s22 = smov 72   ;;  %vm807_vm10 = vcmask 191616  }
  0x19   :  { %112 = vmatpush1.msra.mxu0 %v70_v9  ;;  %v78_v25 = vld [vmem:[%s5301_s29 + $0x80] sm:$0xff]  ;;  %v203_v39 = vld [vmem:[%s5271_s6 + $0x18] sm:$0xff]  ;;  %v202_v40 = vld [vmem:[%s5271_s6 + $0x10] sm:$0xff]  ;;  %s4435_s29 = smov 88   ;;  %s4442_s2 = smov 104   ;;  %vm982_vm11 = vcmask 257216  }
  0x1a   :  { %113 = vmatprep.subr.mxu0 %v4431_v1  ;;  %v60_v26 = vld [vmem:[%s5302_s25] sm:$0xff]  ;;  %4051 = vmatpush3.msra.mxu1 %v203_v39  ;;  %v201_v41 = vld [vmem:[%s5271_s6 + $0x8] sm:$0xff]  ;;  %s4436_s25 = smov 120   ;;  %s5286_s23 = smov 40  }
  0x1b   :  { %114 = vmatpush1.msra.mxu0 %v69_v10  ;;  %v3818_v27 = vld [vmem:[%s5303_s30] ss:$0 sm:$0xff]  ;;  %4052 = vmatprep.subr.mxu1 %v4431_v1  ;;  %s4444_s24 = smov 8   ;;  %s5296_s26 = smov 16  }
  0x1c   :  { %115 = vmatprep.subr.mxu0 %v4431_v1  ;;  %v167_v29 = vld [vmem:[%s5268_s3] sm:$0xff]  ;;  %4053 = vmatpush3.msra.mxu1 %v202_v40  ;;  %s5288_s3 = smov 56   ;;  %s5294_s27 = smov 24  }
  0x1d   :  { %116 = vmatpush1.msra.mxu0 %v68_v11  ;;  %4054 = vmatprep.subr.mxu1 %v4431_v1  ;;  %v200_v42 = vld [vmem:[%s5271_s6] sm:$0xff] }
  0x1e   :  { %117 = vmatprep.subr.mxu0 %v4431_v1  ;;  %4055 = vmatpush3.msra.mxu1 %v201_v41  ;;  %v3820_v47 = vld [vmem:[%s5269_s4] ss:$0 sm:$0xff] }
  0x1f   :  { %118 = vmatpush1.msra.mxu0 %v67_v12  ;;  %4056 = vmatprep.subr.mxu1 %v4431_v1  ;;  %v3821_v49 = vld [vmem:[%s5270_s5] ss:$0 sm:$0xff] }
  0x20   :  { %119 = vmatprep.subr.mxu0 %v4431_v1  ;;  %4057 = vmatpush3.msra.mxu1 %v200_v42  ;;  %v3822_v52 = vld [vmem:[%s5272_s7] ss:$0 sm:$0xff] }
  0x21   :  { %120 = vmatpush1.msra.mxu0 %v66_v13  ;;  %4061 = vmatprep.subr.mxu1 %v4431_v1 }
  0x22   :  { %121 = vmatprep.subr.mxu0 %v4431_v1 }
  0x23   :  { %122 = vmatpush1.msra.mxu0 %v65_v14 }
  0x24   :  { %123 = vmatprep.subr.mxu0 %v4431_v1 }
  0x25   :  { %124 = vmatpush1.msra.mxu0 %v64_v15 }
  0x26   :  { %125 = vmatprep.subr.mxu0 %v4431_v1 }
  0x27   :  { %126 = vmatpush1.msra.mxu0 %v63_v16 }
  0x28   :  { %127 = vmatprep.subr.mxu0 %v4431_v1 }
  0x29   :  { %128 = vmatpush1.msra.mxu0 %v62_v17 }
  0x2a   :  { %145 = vmatprep.subr.mxu0 %v4431_v1 }
  0x2b   :  { %146 = vmatpush2.msra.mxu0 %v85_v18 }
  0x2c   :  { %147 = vmatprep.subr.mxu0 %v4431_v1 }
  0x2d   :  { %148 = vmatpush2.msra.mxu0 %v84_v19 }
  0x2e   :  { %149 = vmatprep.subr.mxu0 %v4431_v1 }
  0x2f   :  { %150 = vmatpush2.msra.mxu0 %v83_v20 }
  0x30   :  { %151 = vmatprep.subr.mxu0 %v4431_v1 }
  0x31   :  { %152 = vmatpush2.msra.mxu0 %v82_v21 }
  0x32   :  { %153 = vmatprep.subr.mxu0 %v4431_v1 }
  0x33   :  { %154 = vmatpush2.msra.mxu0 %v81_v22 }
  0x34   :  { %155 = vmatprep.subr.mxu0 %v4431_v1 }
  0x35   :  { %156 = vmatpush2.msra.mxu0 %v80_v23 }
  0x36   :  { %157 = vmatprep.subr.mxu0 %v4431_v1 }
  0x37   :  { %158 = vmatpush2.msra.mxu0 %v79_v24 }
  0x38   :  { %159 = vmatprep.subr.mxu0 %v4431_v1 }
  0x39   :  { %160 = vmatpush2.msra.mxu0 %v78_v25 }
  0x3a   :  { %162 = vmatmul.mubr.f32.vlgmr.msra.gmra.mxu0 %v60_v26  ;;  %4111 = vmatprep.subr.mxu0 %v4431_v1 }
  0x3b   :  { %4113 = vmatprep.mubr.msk.f32.mxu0 %vm4432_vm2, %v4431_v1 }
  0xfa   :  { %v163_v28 = vpop.f32.mrf.mxu0 }
  0xfb   :  { %v164_v30 = vadd.f32 %v3818_v27, %v163_v28 }
  0xfc   :  { %v165_v31 = vpop.f32.mrf.mxu0 }
  0xfd   :  { %v4654_v32 = vadd.f32 %v167_v29, %v164_v30 }
  0xff   :  { %v172_v33 = vsel %vm171_vm1, %v4654_v32, 0.0 }
 0x100   :  { %173 = vadd.xlane.f32.xlu0 %v172_v33 }
 0x189   :  { %v174_v34 = vpop.xlane.xlu0 %173 }
 0x18a   :  { %v176_v35 = vmul.f32 0.03125, %v174_v34 }
 0x18c   :  { %v177_v36 = vsub.f32 %v4654_v32, %v176_v35 }
 0x18e   :  { %v178_v37 = vmul.f32 %v177_v36, %v177_v36 }
 0x190   :  { %v179_v38 = vsel %vm171_vm1, %v178_v37, 0.0 }
 0x191   :  { %180 = vadd.xlane.f32.xlu0 %v179_v38 }
 0x21a   :  { %v181_v43 = vpop.xlane.xlu0 %180 }
 0x21b   :  { %v182_v44 = vmul.f32 0.03125, %v181_v43 }
 0x21d   :  { %v183_v45 = vadd.f32 1e-12, %v182_v44 }
 0x21f   :  { %4331 = vrsqrt.f32 %v183_v45 }
 0x22c   :  { %v4332_v46 = vpop.eup %4331 }
 0x22d   :  { %v185_v48 = vmul.f32 %v4332_v46, %v177_v36 }
 0x22f   :  { %v192_v50 = vmul.f32 %v3820_v47, %v185_v48 }
 0x231   :  { %v199_v51 = vadd.f32 %v3821_v49, %v192_v50 }
 0x233   :  { %4059 = vmatmul.mubr.msk.f32.vlgmr.msra.gmra.mxu1 %vm171_vm1, %v199_v51 }
 0x234   :  { %4063 = vmatprep.mubr.msk.f32.mxu1 %vm4432_vm2, %v4431_v1 }
 0x2f3   :  { %v280_v53 = vpop.f32.mrf.mxu1 }
 0x2f4   :  { %v281_v54 = vadd.f32 %v3822_v52, %v280_v53 }
 0x2f5   :  { %v4060_v55 = vpop.f32.mrf.mxu1 }
 0x2f6   :  { %285 = vst.msk [vmem:[#allocation2] sm:$0xff] %vm284_vm3, %v281_v54 }
 0x2fd   :  { %v286_v56 = vld [vmem:[#allocation2] sm:$0xf]  ;;  %v4751_v54 = vld [vmem:[#allocation2 + $0x4] sm:$0xf] }
 0x2fe   :  { %378 = vrot.lane.b32.xlu0 %v286_v56, %s5292_s0  ;;  %288 = vrot.lane.b32.xlu1 %v286_v56, %s4434_s19  ;;  %v459_v5 = vld [vmem:[#allocation2] sm:$0xf]  ;;  %v4755_v55 = vld [vmem:[#allocation2 + $0x4] sm:$0xf] }
 0x2ff   :  { %v634_v17 = vld [vmem:[#allocation2] sm:$0xf] }
 0x300   :  { %v809_v42 = vld [vmem:[#allocation2] sm:$0xf] }
 0x370   :  { %v289_v57 = vpop.permute.xlu1 %288  ;;  %v379_v58 = vpop.permute.xlu0 %378 }
 0x371   :  { %4062 = vmatpush3.xpose.msk.msra.mxu1 %vm290_vm4, %v289_v57  ;;  %v4765_v57 = vld [vmem:[#allocation2 + $0x4] sm:$0xf] }
 0x372   :  { %4066 = vmatprep.subr.mxu1 %v4431_v1 }
 0x374   :  { %4064 = vmatmul.mubr.msk.f32.vlgmr.msra.gmra.mxu1 %vm290_vm4, %v286_v56  ;;  %v4761_v56 = vld [vmem:[#allocation2 + $0x4] sm:$0xf] }
 0x375   :  { %4067 = vmatpush3.msk.msra.mxu1 %vm384_vm5, %v379_v58  ;;  %4068 = vmatprep.mubr.msk.f32.mxu1 %vm4432_vm2, %v4431_v1 }
 0x376   :  { %4071 = vmatprep.subr.mxu1 %v4431_v1 }
 0x434   :  { %v361_v59 = vpop.f32.mrf.mxu1 }
 0x435   :  { %v365_v60 = vmul.f32 0.35355338, %v361_v59 }
 0x436   :  { %v4065_v61 = vpop.f32.mrf.mxu1 }
 0x437   :  { %v367_v62 = vsel %vm366_vm6, %v365_v60, -inf }
 0x438   :  { %368 = vmax.xlane.f32.xlu1 %v367_v62 }
 0x4c1   :  { %v369_v63 = vpop.xlane.xlu1 %368 }
 0x4c2   :  { %v370_v0 = vsub.f32 %v365_v60, %v369_v63 }
 0x4c4   :  { %v371_v2 = vmul.f32 1.442695, %v370_v0 }
 0x4c6   :  { %4333 = vpow2.f32 %v371_v2 }
 0x4d3   :  { %v4334_v3 = vpop.eup %4333 }
 0x4d4   :  { %v373_v4 = vsel %vm366_vm6, %v4334_v3, 0.0 }
 0x4d5   :  { %374 = vadd.xlane.f32.xlu0 %v373_v4 }
 0x4eb   :  { %463 = vrot.lane.b32.xlu0 %v459_v5, %s4435_s29 }
 0x4ef   :  { %461 = vrot.lane.b32.xlu0 %v459_v5, %s4436_s25 }
 0x55e   :  { %v375_v6 = vpop.xlane.xlu0 %374 }
 0x55f   :  { %4335 = vrcp.f32 %v375_v6 }
 0x562   :  { %v464_v8 = vpop.permute.xlu0 %463 }
 0x566   :  { %v462_v10 = vpop.permute.xlu0 %461 }
 0x56c   :  { %v4336_v7 = vpop.eup %4335 }
 0x56d   :  { %v377_v9 = vmul.f32 %v4336_v7, %v4334_v3 }
 0x56f   :  { %4069 = vmatmul.mubr.msk.f32.vlgmr.msra.gmra.mxu1 %vm380_vm7, %v377_v9 }
 0x570   :  { %4072 = vmatpush3.xpose.msk.msra.mxu1 %vm290_vm4, %v464_v8  ;;  %4073 = vmatprep.mubr.msk.f32.mxu1 %vm4432_vm2, %v4431_v1 }
 0x571   :  { %4076 = vmatprep.subr.mxu1 %v4431_v1 }
 0x573   :  { %4074 = vmatmul.mubr.msk.f32.vlgmr.msra.gmra.mxu1 %vm290_vm4, %v462_v10 }
 0x574   :  { %4078 = vmatprep.mubr.msk.f32.mxu1 %vm4432_vm2, %v4431_v1 }
 0x62f   :  { %v453_v11 = vpop.f32.mrf.mxu1 }
 0x630   :  { %458 = vst.msk [vmem:[#allocation3] sm:$0xf] %vm457_vm8, %v453_v11 }
 0x631   :  { %v4070_v12 = vpop.f32.mrf.mxu1 }
 0x633   :  { %v535_v13 = vpop.f32.mrf.mxu1 }
 0x634   :  { %v539_v14 = vmul.f32 0.35355338, %v535_v13 }
 0x635   :  { %v4075_v15 = vpop.f32.mrf.mxu1 }
 0x636   :  { %v540_v16 = vsel %vm366_vm6, %v539_v14, -inf }
 0x637   :  { %541 = vmax.xlane.f32.xlu1 %v540_v16 }
 0x648   :  { %551 = vrot.lane.b32.xlu1 %v459_v5, %s5288_s3 }
 0x64c   :  { %638 = vrot.lane.b32.xlu1 %v634_v17, %s4438_s1 }
 0x650   :  { %636 = vrot.lane.b32.xlu1 %v634_v17, %s4439_s20 }
 0x6c0   :  { %v542_v18 = vpop.xlane.xlu1 %541 }
 0x6c1   :  { %v543_v19 = vsub.f32 %v539_v14, %v542_v18 }
 0x6c3   :  { %v544_v20 = vmul.f32 1.442695, %v543_v19 }
 0x6c4   :  { %v552_v21 = vpop.permute.xlu1 %551 }
 0x6c5   :  { %4337 = vpow2.f32 %v544_v20  ;;  %4077 = vmatpush3.msk.msra.mxu1 %vm384_vm5, %v552_v21 }
 0x6c6   :  { %4081 = vmatprep.subr.mxu1 %v4431_v1 }
 0x6c8   :  { %v639_v26 = vpop.permute.xlu1 %638 }
 0x6cc   :  { %v637_v28 = vpop.permute.xlu1 %636 }
 0x6d2   :  { %v4338_v22 = vpop.eup %4337 }
 0x6d3   :  { %v546_v23 = vsel %vm366_vm6, %v4338_v22, 0.0 }
 0x6d4   :  { %547 = vadd.xlane.f32.xlu0 %v546_v23 }
 0x6ea   :  { %726 = vrot.lane.b32.xlu0 %v634_v17, %s5290_s21 }
 0x75d   :  { %v548_v24 = vpop.xlane.xlu0 %547 }
 0x75e   :  { %4339 = vrcp.f32 %v548_v24 }
 0x761   :  { %v727_v29 = vpop.permute.xlu0 %726 }
 0x76b   :  { %v4340_v25 = vpop.eup %4339 }
 0x76c   :  { %v550_v27 = vmul.f32 %v4340_v25, %v4338_v22 }
 0x76e   :  { %4079 = vmatmul.mubr.msk.f32.vlgmr.msra.gmra.mxu1 %vm380_vm7, %v550_v27 }
 0x76f   :  { %4082 = vmatpush3.xpose.msk.msra.mxu1 %vm290_vm4, %v639_v26  ;;  %4083 = vmatprep.mubr.msk.f32.mxu1 %vm4432_vm2, %v4431_v1 }
 0x770   :  { %4086 = vmatprep.subr.mxu1 %v4431_v1 }
 0x772   :  { %4084 = vmatmul.mubr.msk.f32.vlgmr.msra.gmra.mxu1 %vm290_vm4, %v637_v28 }
 0x773   :  { %4087 = vmatpush3.msk.msra.mxu1 %vm384_vm5, %v727_v29  ;;  %4088 = vmatprep.mubr.msk.f32.mxu1 %vm4432_vm2, %v4431_v1 }
 0x774   :  { %4091 = vmatprep.subr.mxu1 %v4431_v1 }
 0x82e   :  { %v4733_v30 = vpop.f32.mrf.mxu1 }
 0x830   :  { %v4080_v31 = vpop.f32.mrf.mxu1 }
 0x832   :  { %v710_v33 = vpop.f32.mrf.mxu1 }
 0x833   :  { %v714_v34 = vmul.f32 0.35355338, %v710_v33 }
 0x834   :  { %v4085_v35 = vpop.f32.mrf.mxu1 }
 0x835   :  { %v715_v36 = vsel %vm366_vm6, %v714_v34, -inf }
 0x836   :  { %716 = vmax.xlane.f32.xlu1 %v715_v36 }
 0x8bf   :  { %v717_v37 = vpop.xlane.xlu1 %716 }
 0x8c0   :  { %v718_v38 = vsub.f32 %v714_v34, %v717_v37 }
 0x8c2   :  { %v719_v39 = vmul.f32 1.442695, %v718_v38 }
 0x8c4   :  { %4341 = vpow2.f32 %v719_v39 }
 0x8d1   :  { %v4342_v40 = vpop.eup %4341 }
 0x8d2   :  { %v721_v41 = vsel %vm366_vm6, %v4342_v40, 0.0 }
 0x8d3   :  { %722 = vadd.xlane.f32.xlu0 %v721_v41 }
 0x8e9   :  { %813 = vrot.lane.b32.xlu0 %v809_v42, %s4441_s22 }
 0x8ed   :  { %811 = vrot.lane.b32.xlu0 %v809_v42, %s4442_s2 }
 0x95c   :  { %v723_v43 = vpop.xlane.xlu0 %722 }
 0x95d   :  { %4343 = vrcp.f32 %v723_v43 }
 0x960   :  { %v814_v45 = vpop.permute.xlu0 %813 }
 0x964   :  { %v812_v47 = vpop.permute.xlu0 %811 }
 0x96a   :  { %v4344_v44 = vpop.eup %4343 }
 0x96b   :  { %v725_v46 = vmul.f32 %v4344_v44, %v4342_v40 }
 0x96d   :  { %4089 = vmatmul.mubr.msk.f32.vlgmr.msra.gmra.mxu1 %vm380_vm7, %v725_v46 }
 0x96e   :  { %4092 = vmatpush3.xpose.msk.msra.mxu1 %vm290_vm4, %v814_v45  ;;  %4093 = vmatprep.mubr.msk.f32.mxu1 %vm4432_vm2, %v4431_v1 }
 0x96f   :  { %4096 = vmatprep.subr.mxu1 %v4431_v1 }
 0x971   :  { %4094 = vmatmul.mubr.msk.f32.vlgmr.msra.gmra.mxu1 %vm290_vm4, %v812_v47 }
 0x972   :  { %4098 = vmatprep.mubr.msk.f32.mxu1 %vm4432_vm2, %v4431_v1 }
 0xa2d   :  { %v4747_v48 = vpop.f32.mrf.mxu1 }
 0xa2f   :  { %v4090_v49 = vpop.f32.mrf.mxu1 }
 0xa31   :  { %v885_v50 = vpop.f32.mrf.mxu1 }
 0xa32   :  { %v889_v51 = vmul.f32 0.35355338, %v885_v50 }
 0xa33   :  { %v4095_v52 = vpop.f32.mrf.mxu1 }
 0xa34   :  { %v890_v53 = vsel %vm366_vm6, %v889_v51, -inf }
 0xa35   :  { %891 = vmax.xlane.f32.xlu1 %v890_v53 }
 0xa46   :  { %901 = vrot.lane.b32.xlu1 %v809_v42, %s5286_s23 }
 0xa4a   :  { %986 = vrot.lane.b32.xlu1 %v4751_v54, %s4434_s19 }
 0xa4e   :  { %1156 = vrot.lane.b32.xlu1 %v4755_v55, %s4435_s29 }
 0xa52   :  { %1154 = vrot.lane.b32.xlu1 %v4755_v55, %s4436_s25 }
 0xa56   :  { %1328 = vrot.lane.b32.xlu1 %v4761_v56, %s4439_s20 }
 0xa5a   :  { %1504 = vrot.lane.b32.xlu1 %v4765_v57, %s4441_s22 }
 0xa5e   :  { %1502 = vrot.lane.b32.xlu1 %v4765_v57, %s4442_s2 }
 0xabe   :  { %v892_v58 = vpop.xlane.xlu1 %891 }
 0xabf   :  { %v893_v59 = vsub.f32 %v889_v51, %v892_v58 }
 0xac1   :  { %v894_v60 = vmul.f32 1.442695, %v893_v59 }
 0xac2   :  { %v902_v61 = vpop.permute.xlu1 %901 }
 0xac3   :  { %4345 = vpow2.f32 %v894_v60  ;;  %4097 = vmatpush3.msk.msra.mxu1 %vm384_vm5, %v902_v61 }
 0xac4   :  { %4101 = vmatprep.subr.mxu1 %v4431_v1 }
 0xac6   :  { %v987_v62 = vpop.permute.xlu1 %986 }
 0xaca   :  { %v1157_v63 = vpop.permute.xlu1 %1156 }
 0xacb   :  { %4112 = vmatpush3.xpose.msk.msra.mxu0 %vm290_vm4, %v1157_v63 }
 0xacc   :  { %4121 = vmatprep.subr.mxu0 %v4431_v1 }
 0xace   :  { %v1155_v0 = vpop.permute.xlu1 %1154 }
 0xacf   :  { %4114 = vmatmul.mubr.msk.f32.vlgmr.msra.gmra.mxu0 %vm290_vm4, %v1155_v0 }
 0xad0   :  { %v4346_v2 = vpop.eup %4345  ;;  %4123 = vmatprep.mubr.msk.f32.mxu0 %vm4432_vm2, %v4431_v1 }
 0xad1   :  { %v896_v3 = vsel %vm366_vm6, %v4346_v2, 0.0 }
 0xad2   :  { %897 = vadd.xlane.f32.xlu0 %v896_v3  ;;  %v1329_v4 = vpop.permute.xlu1 %1328 }
 0xad6   :  { %v1505_v7 = vpop.permute.xlu1 %1504 }
 0xada   :  { %v1503_v8 = vpop.permute.xlu1 %1502 }
 0xae8   :  { %1330 = vrot.lane.b32.xlu0 %v4761_v56, %s4438_s1 }
 0xb5b   :  { %v898_v5 = vpop.xlane.xlu0 %897 }
 0xb5c   :  { %4347 = vrcp.f32 %v898_v5 }
 0xb5f   :  { %v1331_v6 = vpop.permute.xlu0 %1330 }
 0xb60   :  { %4122 = vmatpush3.xpose.msk.msra.mxu0 %vm290_vm4, %v1331_v6 }
 0xb61   :  { %4131 = vmatprep.subr.mxu0 %v4431_v1 }
 0xb63   :  { %4124 = vmatmul.mubr.msk.f32.vlgmr.msra.gmra.mxu0 %vm290_vm4, %v1329_v4 }
 0xb64   :  { %4132 = vmatpush3.xpose.msk.msra.mxu0 %vm290_vm4, %v1505_v7  ;;  %4133 = vmatprep.mubr.msk.f32.mxu0 %vm4432_vm2, %v4431_v1  ;;  %v1678_v7 = vld [vmem:[%s5273_s8 + $0x18] sm:$0xff] }
 0xb65   :  { %4163 = vmatprep.subr.mxu0 %v4431_v1 }
 0xb67   :  { %4134 = vmatmul.mubr.msk.f32.vlgmr.msra.gmra.mxu0 %vm290_vm4, %v1503_v8  ;;  %v1677_v8 = vld [vmem:[%s5273_s8 + $0x10] sm:$0xff] }
 0xb68   :  { %4179 = vmatprep.mubr.msk.f32.mxu0 %vm4432_vm2, %v4431_v1 }
 0xb69   :  { %v4348_v9 = vpop.eup %4347 }
 0xb6a   :  { %v900_v10 = vmul.f32 %v4348_v9, %v4346_v2 }
 0xb6c   :  { %4099 = vmatmul.mubr.msk.f32.vlgmr.msra.gmra.mxu1 %vm380_vm7, %v900_v10  ;;  %v1676_v10 = vld [vmem:[%s5273_s8 + $0x8] sm:$0xff] }
 0xb6d   :  { %4102 = vmatpush3.xpose.msk.msra.mxu1 %vm290_vm4, %v987_v62  ;;  %4103 = vmatprep.mubr.msk.f32.mxu1 %vm4432_vm2, %v4431_v1 }
 0xb6e   :  { %4106 = vmatprep.subr.mxu1 %v4431_v1 }
 0xb70   :  { %4104 = vmatmul.mubr.msk.f32.vlgmr.msra.gmra.mxu1 %vm290_vm4, %v4751_v54 }
 0xb71   :  { %4108 = vmatprep.mubr.msk.f32.mxu1 %vm4432_vm2, %v4431_v1 }
 0xb8f   :  { %v1228_v11 = vpop.f32.mrf.mxu0 }
 0xb90   :  { %v1232_v12 = vmul.f32 0.35355338, %v1228_v11 }
 0xb91   :  { %v4115_v13 = vpop.f32.mrf.mxu0 }
 0xb92   :  { %v1233_v14 = vsel %vm366_vm6, %v1232_v12, -inf }
 0xb93   :  { %1234 = vmax.xlane.f32.xlu0 %v1233_v14 }
 0xc1c   :  { %v1235_v16 = vpop.xlane.xlu0 %1234 }
 0xc1d   :  { %v1236_v18 = vsub.f32 %v1232_v12, %v1235_v16  ;;  %v1675_v12 = vld [vmem:[%s5273_s8] sm:$0xff] }
 0xc1f   :  { %v1237_v21 = vmul.f32 1.442695, %v1236_v18 }
 0xc21   :  { %4349 = vpow2.f32 %v1237_v21  ;;  %v1792_v21 = vld [vmem:[%s5277_s12 + $0x18] sm:$0xff] }
 0xc23   :  { %v1402_v15 = vpop.f32.mrf.mxu0 }
 0xc24   :  { %v1406_v27 = vmul.f32 0.35355338, %v1402_v15 }
 0xc25   :  { %v4125_v17 = vpop.f32.mrf.mxu0 }
 0xc26   :  { %v1407_v31 = vsel %vm366_vm6, %v1406_v27, -inf }
 0xc27   :  { %v1576_v19 = vpop.f32.mrf.mxu0 }
 0xc28   :  { %v1580_v29 = vmul.f32 0.35355338, %v1576_v19 }
 0xc29   :  { %v4135_v20 = vpop.f32.mrf.mxu0 }
 0xc2a   :  { %v1581_v33 = vsel %vm366_vm6, %v1580_v29, -inf }
 0xc2c   :  { %v974_v22 = vpop.f32.mrf.mxu1 }
 0xc2e   :  { %v4100_v23 = vpop.f32.mrf.mxu1  ;;  %v4350_v34 = vpop.eup %4349 }
 0xc2f   :  { %v1239_v35 = vsel %vm366_vm6, %v4350_v34, 0.0  ;;  %v1791_v23 = vld [vmem:[%s5277_s12 + $0x10] sm:$0xff] }
 0xc30   :  { %v1058_v24 = vpop.f32.mrf.mxu1 }
 0xc31   :  { %v1062_v25 = vmul.f32 0.35355338, %v1058_v24  ;;  %v1790_v24 = vld [vmem:[%s5277_s12 + $0x8] sm:$0xff] }
 0xc32   :  { %v4105_v26 = vpop.f32.mrf.mxu1 }
 0xc33   :  { %v1063_v28 = vsel %vm366_vm6, %v1062_v25, -inf  ;;  %v3856_v26 = vld [vmem:[%s5274_s9] ss:$0 sm:$0xff] }
 0xc34   :  { %1064 = vmax.xlane.f32.xlu1 %v1063_v28 }
 0xc38   :  { %1408 = vmax.xlane.f32.xlu1 %v1407_v31 }
 0xc3c   :  { %1582 = vmax.xlane.f32.xlu1 %v1581_v33 }
 0xc40   :  { %1240 = vadd.xlane.f32.xlu1 %v1239_v35  ;;  %v1888_v35 = vld [vmem:[%s5279_s14 + $0x30] sm:$0xff] }
 0xcbd   :  { %v1065_v36 = vpop.xlane.xlu1 %1064 }
 0xcbe   :  { %v1066_v37 = vsub.f32 %v1062_v25, %v1065_v36  ;;  %v1789_v25 = vld [vmem:[%s5277_s12] sm:$0xff] }
 0xcbf   :  { %v1886_v36 = vld [vmem:[%s5279_s14 + $0x20] sm:$0xff] }
 0xcc0   :  { %v1067_v40 = vmul.f32 1.442695, %v1066_v37  ;;  %v1885_v37 = vld [vmem:[%s5279_s14 + $0x18] sm:$0xff] }
 0xcc1   :  { %v1409_v38 = vpop.xlane.xlu1 %1408 }
 0xcc2   :  { %v1410_v39 = vsub.f32 %v1406_v27, %v1409_v38  ;;  %v1884_v38 = vld [vmem:[%s5279_s14 + $0x10] sm:$0xff] }
 0xcc4   :  { %v1411_v41 = vmul.f32 1.442695, %v1410_v39  ;;  %v1883_v39 = vld [vmem:[%s5279_s14 + $0x8] sm:$0xff] }
 0xcc5   :  { %v1583_v42 = vpop.xlane.xlu1 %1582 }
 0xcc6   :  { %4351 = vpow2.f32 %v1411_v41  ;;  %v1584_v43 = vsub.f32 %v1580_v29, %v1583_v42 }
 0xcc7   :  { %4353 = vpow2.f32 %v1067_v40  ;;  %v1882_v40 = vld [vmem:[%s5279_s14] sm:$0xff] }
 0xcc8   :  { %v1585_v44 = vmul.f32 1.442695, %v1584_v43 }
 0xcc9   :  { %v1241_v52 = vpop.xlane.xlu1 %1240 }
 0xcca   :  { %4355 = vpow2.f32 %v1585_v44 }
 0xcd3   :  { %v4352_v45 = vpop.eup %4351 }
 0xcd4   :  { %v1413_v46 = vsel %vm366_vm6, %v4352_v45, 0.0  ;;  %v4354_v47 = vpop.eup %4353 }
 0xcd5   :  { %1414 = vadd.xlane.f32.xlu0 %v1413_v46  ;;  %v1069_v50 = vsel %vm366_vm6, %v4354_v47, 0.0  ;;  %v3860_v46 = vld [vmem:[%s5278_s13] ss:$0 sm:$0xff] }
 0xcd7   :  { %v4356_v49 = vpop.eup %4355 }
 0xcd8   :  { %v1587_v51 = vsel %vm366_vm6, %v4356_v49, 0.0 }
 0xcd9   :  { %1070 = vadd.xlane.f32.xlu0 %v1069_v50  ;;  %1588 = vadd.xlane.f32.xlu1 %v1587_v51 }
 0xcea   :  { %1244 = vrot.lane.b32.xlu1 %v4755_v55, %s5288_s3 }
 0xcee   :  { %1418 = vrot.lane.b32.xlu1 %v4761_v56, %s5290_s21 }
 0xcef   :  { %1074 = vrot.lane.b32.xlu0 %v4751_v54, %s5292_s0 }
 0xcf2   :  { %629 = vrot.lane.b32.xlu1 %v4733_v30, %s4444_s24 }
 0xcf3   :  { %1592 = vrot.lane.b32.xlu0 %v4765_v57, %s5286_s23 }
 0xcf6   :  { %804 = vrot.lane.b32.xlu1 %v4747_v48, %s5296_s26 }
 0xcfa   :  { %979 = vrot.lane.b32.xlu1 %v974_v22, %s5294_s27 }
 0xd5e   :  { %v1415_v53 = vpop.xlane.xlu0 %1414 }
 0xd62   :  { %v1071_v55 = vpop.xlane.xlu0 %1070  ;;  %v1589_v56 = vpop.xlane.xlu1 %1588 }
 0xd63   :  { %4357 = vrcp.f32 %v1071_v55 }
 0xd64   :  { %4359 = vrcp.f32 %v1241_v52 }
 0xd65   :  { %4361 = vrcp.f32 %v1415_v53 }
 0xd66   :  { %v1075_v54 = vpop.permute.xlu0 %1074  ;;  %v1245_v58 = vpop.permute.xlu1 %1244  ;;  %4363 = vrcp.f32 %v1589_v56 }
 0xd67   :  { %4107 = vmatpush3.msk.msra.mxu1 %vm384_vm5, %v1075_v54 }
 0xd68   :  { %4116 = vmatprep.subr.mxu1 %v4431_v1 }
 0xd6a   :  { %v1419_v30 = vpop.permute.xlu1 %1418  ;;  %v1593_v4 = vpop.permute.xlu0 %1592 }
 0xd6e   :  { %v630_v48 = vpop.permute.xlu1 %629 }
 0xd6f   :  { %633 = vst.msk [vmem:[#allocation3] sm:$0xf] %vm632_vm9, %v630_v48 }
 0xd70   :  { %v4358_v57 = vpop.eup %4357 }
 0xd71   :  { %v1073_v59 = vmul.f32 %v4358_v57, %v4354_v47  ;;  %v4360_v60 = vpop.eup %4359 }
 0xd72   :  { %v805_v61 = vpop.permute.xlu1 %804  ;;  %v1243_v62 = vmul.f32 %v4360_v60, %v4350_v34  ;;  %v4362_v63 = vpop.eup %4361  ;;  %v1889_v34 = vld [vmem:[%s5279_s14 + $0x38] sm:$0xff] }
 0xd73   :  { %808 = vst.msk [vmem:[#allocation3] sm:$0xf] %vm807_vm10, %v805_v61  ;;  %4109 = vmatmul.mubr.msk.f32.vlgmr.msra.gmra.mxu1 %vm380_vm7, %v1073_v59  ;;  %v1417_v2 = vmul.f32 %v4362_v63, %v4352_v45  ;;  %v4364_v3 = vpop.eup %4363  ;;  %4164 = vmatpush3.msra.mxu0 %v1889_v34  ;;  %v3858_v63 = vld [vmem:[%s5275_s10] ss:$0 sm:$0xff] }
 0xd74   :  { %4117 = vmatpush3.msk.msra.mxu1 %vm384_vm5, %v1245_v58  ;;  %4118 = vmatprep.mubr.msk.f32.mxu1 %vm4432_vm2, %v4431_v1  ;;  %v1591_v5 = vmul.f32 %v4364_v3, %v4356_v49  ;;  %v3862_v3 = vld [vmem:[%s5280_s15] ss:$0 sm:$0xff] }
 0xd75   :  { %4126 = vmatprep.subr.mxu1 %v4431_v1  ;;  %4165 = vmatprep.subr.mxu0 %v4431_v1 }
 0xd76   :  { %v980_v0 = vpop.permute.xlu1 %979  ;;  %4166 = vmatpush3.msra.mxu0 %v1888_v35 }
 0xd77   :  { %983 = vst.msk [vmem:[#allocation3] sm:$0xf] %vm982_vm11, %v980_v0  ;;  %4119 = vmatmul.mubr.msk.f32.vlgmr.msra.gmra.mxu1 %vm380_vm7, %v1243_v62  ;;  %4167 = vmatprep.subr.mxu0 %v4431_v1 }
 0xd78   :  { %4127 = vmatpush3.msk.msra.mxu1 %vm384_vm5, %v1419_v30  ;;  %4128 = vmatprep.mubr.msk.f32.mxu1 %vm4432_vm2, %v4431_v1 }
 0xd79   :  { %4136 = vmatprep.subr.mxu1 %v4431_v1 }
 0xd7b   :  { %4129 = vmatmul.mubr.msk.f32.vlgmr.msra.gmra.mxu1 %vm380_vm7, %v1417_v2  ;;  %v3859_v2 = vld [vmem:[%s5276_s11] ss:$0 sm:$0xff] }
 0xd7c   :  { %4137 = vmatpush3.msk.msra.mxu1 %vm384_vm5, %v1593_v4  ;;  %4138 = vmatprep.mubr.msk.f32.mxu1 %vm4432_vm2, %v4431_v1 }
 0xd7d   :  { %4141 = vmatprep.subr.mxu1 %v4431_v1 }
 0xd7f   :  { %4139 = vmatmul.mubr.msk.f32.vlgmr.msra.gmra.mxu1 %vm380_vm7, %v1591_v5 }
 0xd80   :  { %4149 = vmatprep.mubr.msk.f32.mxu1 %vm4432_vm2, %v4431_v1  ;;  %4142 = vmatpush3.msra.mxu1 %v1678_v7 }
 0xd81   :  { %4143 = vmatprep.subr.mxu1 %v4431_v1 }
 0xd82   :  { %4144 = vmatpush3.msra.mxu1 %v1677_v8 }
 0xd83   :  { %4145 = vmatprep.subr.mxu1 %v4431_v1 }
 0xd84   :  { %4146 = vmatpush3.msra.mxu1 %v1676_v10 }
 0xd85   :  { %4147 = vmatprep.subr.mxu1 %v4431_v1 }
 0xd86   :  { %4148 = vmatpush3.msra.mxu1 %v1675_v12 }
 0xd87   :  { %4152 = vmatprep.subr.mxu1 %v4431_v1 }
 0xe33   :  { %v1147_v6 = vpop.f32.mrf.mxu1 }
 0xe34   :  { %1151 = vst.msk [vmem:[#allocation3 + $0x4] sm:$0xf] %vm457_vm8, %v1147_v6 }
 0xe35   :  { %v4110_v9 = vpop.f32.mrf.mxu1 }
 0xe37   :  { %v1317_v11 = vpop.f32.mrf.mxu1 }
 0xe38   :  { %1322 = vrot.lane.b32.xlu0 %v1317_v11, %s4444_s24 }
 0xe39   :  { %v4120_v13 = vpop.f32.mrf.mxu1 }
 0xe3b   :  { %v1491_v14 = vpop.f32.mrf.mxu1 }
 0xe3c   :  { %1496 = vrot.lane.b32.xlu0 %v1491_v14, %s5296_s26 }
 0xe3d   :  { %v4130_v15 = vpop.f32.mrf.mxu1 }
 0xe3e   :  { %v3871_v15 = vld [vmem:[%s5271_s6 + $0x38] sm:$0xff] }
 0xe3f   :  { %v1665_v16 = vpop.f32.mrf.mxu1 }
 0xe40   :  { %1670 = vrot.lane.b32.xlu0 %v1665_v16, %s5294_s27  ;;  %v3870_v16 = vld [vmem:[%s5271_s6 + $0x30] sm:$0xff] }
 0xe41   :  { %v4140_v17 = vpop.f32.mrf.mxu1 }
 0xe42   :  { %v3869_v17 = vld [vmem:[%s5271_s6 + $0x28] sm:$0xff] }
 0xeaa   :  { %v1323_v18 = vpop.permute.xlu0 %1322 }
 0xeab   :  { %1325 = vst.msk [vmem:[#allocation3 + $0x4] sm:$0xf] %vm632_vm9, %v1323_v18  ;;  %v3868_v18 = vld [vmem:[%s5271_s6 + $0x20] sm:$0xff] }
 0xeae   :  { %v1497_v19 = vpop.permute.xlu0 %1496 }
 0xeaf   :  { %1499 = vst.msk [vmem:[#allocation3 + $0x4] sm:$0xf] %vm807_vm10, %v1497_v19 }
 0xeb2   :  { %v1671_v20 = vpop.permute.xlu0 %1670 }
 0xeb3   :  { %1673 = vst.msk [vmem:[#allocation3 + $0x4] sm:$0xf] %vm982_vm11, %v1671_v20 }
 0xeba   :  { %v1674_v22 = vld [vmem:[#allocation3] sm:$0xff] }
 0xebb   :  { %4150 = vmatmul.mubr.msk.f32.vlgmr.msra.gmra.mxu1 %vm171_vm1, %v1674_v22 }
 0xebc   :  { %4153 = vmatpush3.msra.mxu1 %v1792_v21  ;;  %4160 = vmatprep.mubr.msk.f32.mxu1 %vm4432_vm2, %v4431_v1 }
 0xebd   :  { %4154 = vmatprep.subr.mxu1 %v4431_v1 }
 0xebe   :  { %4155 = vmatpush3.msra.mxu1 %v1791_v23  ;;  %v3866_v23 = vld [vmem:[%s5269_s4 + $0x1] ss:$0 sm:$0xff]  ;;  %s5304_s4 = smov 64  }
 0xebf   :  { %4156 = vmatprep.subr.mxu1 %v4431_v1 }
 0xec0   :  { %4157 = vmatpush3.msra.mxu1 %v1790_v24 }
 0xec1   :  { %4158 = vmatprep.subr.mxu1 %v4431_v1 }
 0xec2   :  { %4159 = vmatpush3.msra.mxu1 %v1789_v25  ;;  %v3867_v25 = vld [vmem:[%s5270_s5 + $0x1] ss:$0 sm:$0xff]  ;;  %s5305_s5 = smov 48  }
 0xec3   :  { %4182 = vmatprep.subr.mxu1 %v4431_v1 }
 0xf7b   :  { %v1755_v27 = vpop.f32.mrf.mxu1 }
 0xf7c   :  { %v1756_v28 = vadd.f32 %v3856_v26, %v1755_v27 }
 0xf7d   :  { %v4151_v29 = vpop.f32.mrf.mxu1 }
 0xf7e   :  { %v1759_v31 = vadd.f32 %v1756_v28, %v4654_v32  ;;  %v1887_v32 = vld [vmem:[%s5279_s14 + $0x28] sm:$0xff]  ;;  %v3873_v28 = vld [vmem:[%s5272_s7 + $0x1] ss:$0 sm:$0xff]  ;;  %s5306_s7 = smov 56  }
 0xf7f   :  { %4168 = vmatpush3.msra.mxu0 %v1887_v32 }
 0xf80   :  { %4161 = vmatmul.mubr.msk.f32.vlgmr.msra.gmra.mxu1 %vm171_vm1, %v1759_v31  ;;  %v1762_v33 = vsel %vm171_vm1, %v1759_v31, 0.0  ;;  %4169 = vmatprep.subr.mxu0 %v4431_v1 }
 0xf81   :  { %1763 = vadd.xlane.f32.xlu1 %v1762_v33  ;;  %4190 = vmatprep.mubr.msk.f32.mxu1 %vm4432_vm2, %v4431_v1 }
 0xf82   :  { %4170 = vmatpush3.msra.mxu0 %v1886_v36  ;;  %4183 = vmatpush3.msra.mxu1 %v3871_v15 }
 0xf83   :  { %4171 = vmatprep.subr.mxu0 %v4431_v1  ;;  %4184 = vmatprep.subr.mxu1 %v4431_v1 }
 0xf84   :  { %4172 = vmatpush3.msra.mxu0 %v1885_v37  ;;  %4185 = vmatpush3.msra.mxu1 %v3870_v16 }
 0xf85   :  { %4173 = vmatprep.subr.mxu0 %v4431_v1  ;;  %4186 = vmatprep.subr.mxu1 %v4431_v1 }
 0xf86   :  { %4174 = vmatpush3.msra.mxu0 %v1884_v38  ;;  %4187 = vmatpush3.msra.mxu1 %v3869_v17 }
 0xf87   :  { %4175 = vmatprep.subr.mxu0 %v4431_v1  ;;  %4188 = vmatprep.subr.mxu1 %v4431_v1 }
 0xf88   :  { %4176 = vmatpush3.msra.mxu0 %v1883_v39  ;;  %4189 = vmatpush3.msra.mxu1 %v3868_v18 }
 0xf89   :  { %4177 = vmatprep.subr.mxu0 %v4431_v1  ;;  %4193 = vmatprep.subr.mxu1 %v4431_v1 }
 0xf8a   :  { %4178 = vmatpush3.msra.mxu0 %v1882_v40 }
 0xf8b   :  { %4203 = vmatprep.subr.mxu0 %v4431_v1 }
0x100a   :  { %v1764_v41 = vpop.xlane.xlu1 %1763 }
0x100b   :  { %v1765_v42 = vmul.f32 0.03125, %v1764_v41 }
0x100d   :  { %v1766_v43 = vsub.f32 %v1759_v31, %v1765_v42 }
0x100f   :  { %v1767_v44 = vmul.f32 %v1766_v43, %v1766_v43 }
0x1011   :  { %v1768_v45 = vsel %vm171_vm1, %v1767_v44, 0.0 }
0x1012   :  { %1769 = vadd.xlane.f32.xlu0 %v1768_v45 }
0x1040   :  { %v1869_v47 = vpop.f32.mrf.mxu1 }
0x1041   :  { %v1870_v49 = vadd.f32 %v3860_v46, %v1869_v47 }
0x1042   :  { %v4162_v50 = vpop.f32.mrf.mxu1 }
0x1043   :  { %v1874_v51 = vmul.f32 0.044715, %v1870_v49  ;;  %v1873_v58 = vmul.f32 0.5, %v1870_v49 }
0x1045   :  { %v1875_v52 = vmul.f32 %v1874_v51, %v1870_v49 }
0x1047   :  { %v1876_v53 = vmul.f32 %v1875_v52, %v1870_v49 }
0x1049   :  { %v1877_v55 = vadd.f32 %v1876_v53, %v1870_v49 }
0x104b   :  { %v1878_v56 = vmul.f32 0.7978846, %v1877_v55 }
0x104d   :  { %4365 = vtanh.f32 %v1878_v56 }
0x105a   :  { %v4366_v54 = vpop.eup %4365 }
0x105b   :  { %v1880_v30 = vadd.f32 1.0, %v4366_v54 }
0x105d   :  { %v1881_v48 = vmul.f32 %v1880_v30, %v1873_v58 }
0x105f   :  { %4180 = vmatmul.mubr.msk.f32.vlgmr.msra.gmra.mxu0 %vm93_vm0, %v1881_v48 }
0x1060   :  { %4205 = vmatprep.mubr.msk.f32.mxu0 %vm4432_vm2, %v4431_v1 }
0x109b   :  { %v1770_v57 = vpop.xlane.xlu0 %1769 }
0x109c   :  { %v1771_v59 = vmul.f32 0.03125, %v1770_v57 }
0x109e   :  { %v1772_v60 = vadd.f32 1e-12, %v1771_v59 }
0x10a0   :  { %4367 = vrsqrt.f32 %v1772_v60 }
0x10ad   :  { %v4368_v61 = vpop.eup %4367 }
0x10ae   :  { %v1774_v62 = vmul.f32 %v4368_v61, %v1766_v43 }
0x10b0   :  { %v1781_v0 = vmul.f32 %v3858_v63, %v1774_v62 }
0x10b2   :  { %v1788_v5 = vadd.f32 %v3859_v2, %v1781_v0 }
0x111f   :  { %v1966_v4 = vpop.f32.mrf.mxu0 }
0x1120   :  { %v1967_v6 = vadd.f32 %v3862_v3, %v1966_v4 }
0x1121   :  { %v4181_v7 = vpop.f32.mrf.mxu0 }
0x1122   :  { %v4942_v8 = vadd.f32 %v1967_v6, %v1788_v5 }
0x1124   :  { %v1975_v9 = vsel %vm171_vm1, %v4942_v8, 0.0 }
0x1125   :  { %1976 = vadd.xlane.f32.xlu0 %v1975_v9 }
0x11ae   :  { %v1977_v10 = vpop.xlane.xlu0 %1976 }
0x11af   :  { %v1978_v11 = vmul.f32 0.03125, %v1977_v10 }
0x11b1   :  { %v1979_v12 = vsub.f32 %v4942_v8, %v1978_v11 }
0x11b3   :  { %v1980_v13 = vmul.f32 %v1979_v12, %v1979_v12 }
0x11b5   :  { %v1981_v14 = vsel %vm171_vm1, %v1980_v13, 0.0 }
0x11b6   :  { %1982 = vadd.xlane.f32.xlu1 %v1981_v14 }
0x123f   :  { %v1983_v19 = vpop.xlane.xlu1 %1982 }
0x1240   :  { %v1984_v20 = vmul.f32 0.03125, %v1983_v19 }
0x1242   :  { %v1985_v21 = vadd.f32 1e-12, %v1984_v20 }
0x1244   :  { %4369 = vrsqrt.f32 %v1985_v21 }
0x1251   :  { %v4370_v22 = vpop.eup %4369 }
0x1252   :  { %v1987_v24 = vmul.f32 %v4370_v22, %v1979_v12 }
0x1254   :  { %v1994_v26 = vmul.f32 %v3866_v23, %v1987_v24 }
0x1256   :  { %v2001_v27 = vadd.f32 %v3867_v25, %v1994_v26 }
0x1258   :  { %4191 = vmatmul.mubr.msk.f32.vlgmr.msra.gmra.mxu1 %vm171_vm1, %v2001_v27 }
0x1259   :  { %4195 = vmatprep.mubr.msk.f32.mxu1 %vm4432_vm2, %v4431_v1 }
0x1318   :  { %v2084_v29 = vpop.f32.mrf.mxu1 }
0x1319   :  { %v2085_v31 = vadd.f32 %v3873_v28, %v2084_v29 }
0x131a   :  { %v4192_v33 = vpop.f32.mrf.mxu1 }
0x131b   :  { %2088 = vst.msk [vmem:[#allocation2] sm:$0xff] %vm284_vm3, %v2085_v31 }
0x1322   :  { %v4977_v34 = vld [vmem:[#allocation2] sm:$0xf]  ;;  %v4994_v37 = vld [vmem:[#allocation2 + $0x4] sm:$0xf] }
0x1323   :  { %v2089_v35 = vld [vmem:[#allocation2] sm:$0xf]  ;;  %2261 = vrot.lane.b32.xlu1 %v4977_v34, %s4435_s29  ;;  %v5000_v38 = vld [vmem:[#allocation2 + $0x4] sm:$0xf] }
0x1324   :  { %2091 = vrot.lane.b32.xlu0 %v2089_v35, %s4434_s19  ;;  %v4982_v32 = vld [vmem:[#allocation2] sm:$0xf]  ;;  %v5006_v39 = vld [vmem:[#allocation2 + $0x4] sm:$0xf] }
0x1325   :  { %v4988_v36 = vld [vmem:[#allocation2] sm:$0xf]  ;;  %v5012_v40 = vld [vmem:[#allocation2 + $0x4] sm:$0xf] }
0x1327   :  { %2259 = vrot.lane.b32.xlu1 %v4977_v34, %s4436_s25 }
0x1328   :  { %2435 = vrot.lane.b32.xlu0 %v4982_v32, %s4438_s1 }
0x132b   :  { %2433 = vrot.lane.b32.xlu1 %v4982_v32, %s4439_s20 }
0x132c   :  { %2609 = vrot.lane.b32.xlu0 %v4988_v36, %s4441_s22 }
0x132f   :  { %2607 = vrot.lane.b32.xlu1 %v4988_v36, %s4442_s2 }
0x1330   :  { %2781 = vrot.lane.b32.xlu0 %v4994_v37, %s4434_s19  ;;  %s5307_s19 = smov 40  }
0x1333   :  { %2951 = vrot.lane.b32.xlu1 %v5000_v38, %s4435_s29  ;;  %s5308_s29 = smov 16  }
0x1334   :  { %2949 = vrot.lane.b32.xlu0 %v5000_v38, %s4436_s25  ;;  %s5309_s25 = smov 24  }
0x1337   :  { %3125 = vrot.lane.b32.xlu1 %v5006_v39, %s4438_s1 }
0x1338   :  { %3123 = vrot.lane.b32.xlu0 %v5006_v39, %s4439_s20 }
0x133b   :  { %3299 = vrot.lane.b32.xlu1 %v5012_v40, %s4441_s22 }
0x133c   :  { %3297 = vrot.lane.b32.xlu0 %v5012_v40, %s4442_s2 }
0x133f   :  { %2179 = vrot.lane.b32.xlu1 %v2089_v35, %s5304_s4 }
0x1395   :  { %v2262_v41 = vpop.permute.xlu1 %2261 }
0x1396   :  { %v2092_v42 = vpop.permute.xlu0 %2091  ;;  %4204 = vmatpush3.xpose.msk.msra.mxu0 %vm290_vm4, %v2262_v41 }
0x1397   :  { %4194 = vmatpush3.xpose.msk.msra.mxu1 %vm290_vm4, %v2092_v42  ;;  %4213 = vmatprep.subr.mxu0 %v4431_v1 }
0x1398   :  { %4198 = vmatprep.subr.mxu1 %v4431_v1 }
0x1399   :  { %v2260_v43 = vpop.permute.xlu1 %2259 }
0x139a   :  { %4196 = vmatmul.mubr.msk.f32.vlgmr.msra.gmra.mxu1 %vm290_vm4, %v2089_v35  ;;  %v2436_v44 = vpop.permute.xlu0 %2435  ;;  %4206 = vmatmul.mubr.msk.f32.vlgmr.msra.gmra.mxu0 %vm290_vm4, %v2260_v43 }
0x139b   :  { %4200 = vmatprep.mubr.msk.f32.mxu1 %vm4432_vm2, %v4431_v1  ;;  %4214 = vmatpush3.xpose.msk.msra.mxu0 %vm290_vm4, %v2436_v44 }
0x139c   :  { %4215 = vmatprep.mubr.msk.f32.mxu0 %vm4432_vm2, %v4431_v1  ;;  %4223 = vmatprep.subr.mxu0 %v4431_v1 }
0x139d   :  { %v2434_v45 = vpop.permute.xlu1 %2433 }
0x139e   :  { %v2610_v46 = vpop.permute.xlu0 %2609  ;;  %4216 = vmatmul.mubr.msk.f32.vlgmr.msra.gmra.mxu0 %vm290_vm4, %v2434_v45 }
0x139f   :  { %4224 = vmatpush3.xpose.msk.msra.mxu0 %vm290_vm4, %v2610_v46  ;;  %4225 = vmatprep.mubr.msk.f32.mxu0 %vm4432_vm2, %v4431_v1 }
0x13a0   :  { %4233 = vmatprep.subr.mxu0 %v4431_v1 }
0x13a1   :  { %v2608_v47 = vpop.permute.xlu1 %2607 }
0x13a2   :  { %v2782_v49 = vpop.permute.xlu0 %2781  ;;  %4226 = vmatmul.mubr.msk.f32.vlgmr.msra.gmra.mxu0 %vm290_vm4, %v2608_v47 }
0x13a3   :  { %4234 = vmatpush3.xpose.msk.msra.mxu0 %vm290_vm4, %v2782_v49  ;;  %4235 = vmatprep.mubr.msk.f32.mxu0 %vm4432_vm2, %v4431_v1 }
0x13a4   :  { %4243 = vmatprep.subr.mxu0 %v4431_v1 }
0x13a5   :  { %v2952_v50 = vpop.permute.xlu1 %2951 }
0x13a6   :  { %v2950_v51 = vpop.permute.xlu0 %2949  ;;  %4236 = vmatmul.mubr.msk.f32.vlgmr.msra.gmra.mxu0 %vm290_vm4, %v4994_v37 }
0x13a7   :  { %4244 = vmatpush3.xpose.msk.msra.mxu0 %vm290_vm4, %v2952_v50  ;;  %4245 = vmatprep.mubr.msk.f32.mxu0 %vm4432_vm2, %v4431_v1 }
0x13a8   :  { %4253 = vmatprep.subr.mxu0 %v4431_v1 }
0x13a9   :  { %v3126_v52 = vpop.permute.xlu1 %3125 }
0x13aa   :  { %4246 = vmatmul.mubr.msk.f32.vlgmr.msra.gmra.mxu0 %vm290_vm4, %v2950_v51  ;;  %v3124_v53 = vpop.permute.xlu0 %3123 }
0x13ab   :  { %4254 = vmatpush3.xpose.msk.msra.mxu0 %vm290_vm4, %v3126_v52  ;;  %4255 = vmatprep.mubr.msk.f32.mxu0 %vm4432_vm2, %v4431_v1 }
0x13ac   :  { %4263 = vmatprep.subr.mxu0 %v4431_v1 }
0x13ad   :  { %v3300_v55 = vpop.permute.xlu1 %3299 }
0x13ae   :  { %4256 = vmatmul.mubr.msk.f32.vlgmr.msra.gmra.mxu0 %vm290_vm4, %v3124_v53  ;;  %v3298_v56 = vpop.permute.xlu0 %3297 }
0x13af   :  { %4264 = vmatpush3.xpose.msk.msra.mxu0 %vm290_vm4, %v3300_v55  ;;  %4265 = vmatprep.mubr.msk.f32.mxu0 %vm4432_vm2, %v4431_v1 }
0x13b0   :  { %4273 = vmatprep.subr.mxu0 %v4431_v1 }
0x13b1   :  { %v2180_v54 = vpop.permute.xlu1 %2179 }
0x13b2   :  { %4199 = vmatpush3.msk.msra.mxu1 %vm384_vm5, %v2180_v54  ;;  %4266 = vmatmul.mubr.msk.f32.vlgmr.msra.gmra.mxu0 %vm290_vm4, %v3298_v56 }
0x13b3   :  { %4208 = vmatprep.subr.mxu1 %v4431_v1  ;;  %4281 = vmatprep.mubr.msk.f32.mxu0 %vm4432_vm2, %v4431_v1 }
0x145a   :  { %v2163_v58 = vpop.f32.mrf.mxu1  ;;  %v2333_v48 = vpop.f32.mrf.mxu0 }
0x145b   :  { %v2167_v30 = vmul.f32 0.35355338, %v2163_v58  ;;  %v2337_v57 = vmul.f32 0.35355338, %v2333_v48 }
0x145c   :  { %v4197_v59 = vpop.f32.mrf.mxu1  ;;  %v4207_v60 = vpop.f32.mrf.mxu0 }
0x145d   :  { %v2168_v61 = vsel %vm366_vm6, %v2167_v30, -inf  ;;  %v2338_v62 = vsel %vm366_vm6, %v2337_v57, -inf }
0x145e   :  { %2169 = vmax.xlane.f32.xlu1 %v2168_v61  ;;  %2339 = vmax.xlane.f32.xlu0 %v2338_v62  ;;  %v2507_v63 = vpop.f32.mrf.mxu0 }
0x145f   :  { %v2511_v0 = vmul.f32 0.35355338, %v2507_v63 }
0x1460   :  { %v4217_v2 = vpop.f32.mrf.mxu0 }
0x1461   :  { %v2512_v3 = vsel %vm366_vm6, %v2511_v0, -inf }
0x1462   :  { %2513 = vmax.xlane.f32.xlu0 %v2512_v3  ;;  %v2681_v4 = vpop.f32.mrf.mxu0 }
0x1463   :  { %v2685_v5 = vmul.f32 0.35355338, %v2681_v4 }
0x1464   :  { %v4227_v6 = vpop.f32.mrf.mxu0 }
0x1465   :  { %v2686_v7 = vsel %vm366_vm6, %v2685_v5, -inf }
0x1466   :  { %v2853_v9 = vpop.f32.mrf.mxu0  ;;  %2687 = vmax.xlane.f32.xlu1 %v2686_v7 }
0x1467   :  { %v2857_v10 = vmul.f32 0.35355338, %v2853_v9 }
0x1468   :  { %v4237_v11 = vpop.f32.mrf.mxu0 }
0x1469   :  { %v2858_v12 = vsel %vm366_vm6, %v2857_v10, -inf }
0x146a   :  { %2859 = vmax.xlane.f32.xlu0 %v2858_v12  ;;  %v3023_v13 = vpop.f32.mrf.mxu0 }
0x146b   :  { %v3027_v14 = vmul.f32 0.35355338, %v3023_v13 }
0x146c   :  { %v4247_v15 = vpop.f32.mrf.mxu0 }
0x146d   :  { %v3028_v16 = vsel %vm366_vm6, %v3027_v14, -inf }
0x146e   :  { %v3197_v17 = vpop.f32.mrf.mxu0  ;;  %3029 = vmax.xlane.f32.xlu1 %v3028_v16 }
0x146f   :  { %v3201_v18 = vmul.f32 0.35355338, %v3197_v17 }
0x1470   :  { %v4257_v19 = vpop.f32.mrf.mxu0 }
0x1471   :  { %v3202_v20 = vsel %vm366_vm6, %v3201_v18, -inf }
0x1472   :  { %3203 = vmax.xlane.f32.xlu0 %v3202_v20  ;;  %v3371_v21 = vpop.f32.mrf.mxu0 }
0x1473   :  { %v3375_v23 = vmul.f32 0.35355338, %v3371_v21 }
0x1474   :  { %v4267_v22 = vpop.f32.mrf.mxu0 }
0x1475   :  { %v3376_v24 = vsel %vm366_vm6, %v3375_v23, -inf }
0x147f   :  { %2523 = vrot.lane.b32.xlu1 %v4982_v32, %s5305_s5 }
0x1488   :  { %2349 = vrot.lane.b32.xlu0 %v4977_v34, %s5306_s7 }
0x14a3   :  { %3377 = vmax.xlane.f32.xlu1 %v3376_v24 }
0x14b4   :  { %2697 = vrot.lane.b32.xlu1 %v4988_v36, %s5307_s19 }
0x14e7   :  { %v2170_v25 = vpop.xlane.xlu1 %2169  ;;  %v2340_v27 = vpop.xlane.xlu0 %2339 }
0x14e8   :  { %v2171_v26 = vsub.f32 %v2167_v30, %v2170_v25  ;;  %v2341_v28 = vsub.f32 %v2337_v57, %v2340_v27 }
0x14ea   :  { %v2172_v29 = vmul.f32 1.442695, %v2171_v26  ;;  %v2342_v31 = vmul.f32 1.442695, %v2341_v28 }
0x14eb   :  { %v2514_v33 = vpop.xlane.xlu0 %2513 }
0x14ec   :  { %4371 = vpow2.f32 %v2172_v29  ;;  %v2515_v35 = vsub.f32 %v2511_v0, %v2514_v33 }
0x14ed   :  { %4373 = vpow2.f32 %v2342_v31 }
0x14ee   :  { %v2516_v32 = vmul.f32 1.442695, %v2515_v35 }
0x14ef   :  { %v2688_v45 = vpop.xlane.xlu1 %2687 }
0x14f0   :  { %4375 = vpow2.f32 %v2516_v32  ;;  %v2689_v46 = vsub.f32 %v2685_v5, %v2688_v45 }
0x14f2   :  { %v2690_v51 = vmul.f32 1.442695, %v2689_v46 }
0x14f3   :  { %v2860_v47 = vpop.xlane.xlu0 %2859 }
0x14f4   :  { %v2861_v50 = vsub.f32 %v2857_v10, %v2860_v47  ;;  %4377 = vpow2.f32 %v2690_v51 }
0x14f6   :  { %v2862_v55 = vmul.f32 1.442695, %v2861_v50  ;;  %v3909_v50 = vld [vmem:[%s5273_s8 + $0x30] sm:$0xff] }
0x14f7   :  { %v3030_v49 = vpop.xlane.xlu1 %3029 }
0x14f8   :  { %v3031_v52 = vsub.f32 %v3027_v14, %v3030_v49  ;;  %4379 = vpow2.f32 %v2862_v55  ;;  %v3910_v49 = vld [vmem:[%s5273_s8 + $0x38] sm:$0xff]  ;;  %v3907_v55 = vld [vmem:[%s5273_s8 + $0x20] sm:$0xff] }
0x14f9   :  { %v4372_v34 = vpop.eup %4371  ;;  %4274 = vmatpush3.msra.mxu0 %v3910_v49 }
0x14fa   :  { %v5076_v41 = vpop.eup %4373  ;;  %v2174_v42 = vsel %vm366_vm6, %v4372_v34, 0.0  ;;  %v3032_v56 = vmul.f32 1.442695, %v3031_v52  ;;  %4275 = vmatprep.subr.mxu0 %v4431_v1  ;;  %v3908_v52 = vld [vmem:[%s5273_s8 + $0x28] sm:$0xff] }
0x14fb   :  { %2175 = vadd.xlane.f32.xlu0 %v2174_v42  ;;  %v2344_v36 = vsel %vm366_vm6, %v5076_v41, 0.0  ;;  %v3204_v53 = vpop.xlane.xlu0 %3203  ;;  %4276 = vmatpush3.msra.mxu0 %v3909_v50 }
0x14fc   :  { %2345 = vadd.xlane.f32.xlu1 %v2344_v36  ;;  %v3205_v54 = vsub.f32 %v3201_v18, %v3204_v53  ;;  %4381 = vpow2.f32 %v3032_v56  ;;  %4277 = vmatprep.subr.mxu0 %v4431_v1 }
0x14fd   :  { %v5081_v43 = vpop.eup %4375  ;;  %4278 = vmatpush3.msra.mxu0 %v3908_v52 }
0x14fe   :  { %v2518_v44 = vsel %vm366_vm6, %v5081_v43, 0.0  ;;  %v3206_v58 = vmul.f32 1.442695, %v3205_v54  ;;  %4279 = vmatprep.subr.mxu0 %v4431_v1 }
0x14ff   :  { %2519 = vadd.xlane.f32.xlu0 %v2518_v44  ;;  %v2350_v5 = vpop.permute.xlu0 %2349  ;;  %4280 = vmatpush3.msra.mxu0 %v3907_v55 }
0x1500   :  { %4383 = vpow2.f32 %v3206_v58  ;;  %v3921_v58 = vld [vmem:[%s5277_s12 + $0x38] sm:$0xff]  ;;  %4295 = vmatprep.subr.mxu0 %v4431_v1 }
0x1501   :  { %v4378_v30 = vpop.eup %4377 }
0x1502   :  { %v2692_v60 = vsel %vm366_vm6, %v4378_v30, 0.0 }
0x150d   :  { %2869 = vrot.lane.b32.xlu1 %v4994_v37, %s5304_s4  ;;  %v2524_v37 = vpop.permute.xlu1 %2523 }
0x1515   :  { %3039 = vrot.lane.b32.xlu0 %v5000_v38, %s5306_s7  ;;  %v5089_v38 = vpop.eup %4379 }
0x1516   :  { %v5092_v61 = vpop.eup %4381  ;;  %v2864_v62 = vsel %vm366_vm6, %v5089_v38, 0.0 }
0x1517   :  { %v3034_v63 = vsel %vm366_vm6, %v5092_v61, 0.0  ;;  %v5098_v0 = vpop.eup %4383 }
0x1518   :  { %v3208_v2 = vsel %vm366_vm6, %v5098_v0, 0.0 }
0x152c   :  { %v3378_v48 = vpop.xlane.xlu1 %3377 }
0x152d   :  { %v3379_v57 = vsub.f32 %v3375_v23, %v3378_v48 }
0x152f   :  { %v3380_v59 = vmul.f32 1.442695, %v3379_v57 }
0x1530   :  { %v2698_v6 = vpop.permute.xlu1 %2697 }
0x1531   :  { %2693 = vadd.xlane.f32.xlu1 %v2692_v60  ;;  %4385 = vpow2.f32 %v3380_v59 }
0x1534   :  { %2865 = vadd.xlane.f32.xlu0 %v2864_v62 }
0x1535   :  { %3035 = vadd.xlane.f32.xlu1 %v3034_v63 }
0x1538   :  { %3209 = vadd.xlane.f32.xlu0 %v3208_v2  ;;  %v3919_v2 = vld [vmem:[%s5277_s12 + $0x28] sm:$0xff] }
0x153e   :  { %v5102_v3 = vpop.eup %4385 }
0x153f   :  { %v3382_v4 = vsel %vm366_vm6, %v5102_v3, 0.0 }
0x1540   :  { %3383 = vadd.xlane.f32.xlu0 %v3382_v4  ;;  %v3912_v4 = vld [vmem:[%s5274_s9 + $0x1] ss:$0 sm:$0xff] }
0x1546   :  { %3213 = vrot.lane.b32.xlu1 %v5006_v39, %s5305_s5 }
0x1556   :  { %3387 = vrot.lane.b32.xlu0 %v5012_v40, %s5307_s19  ;;  %s4447_s19 = smov [#allocation4]  }
0x1584   :  { %v2176_v7 = vpop.xlane.xlu0 %2175 }
0x1585   :  { %4387 = vrcp.f32 %v2176_v7  ;;  %v2346_v9 = vpop.xlane.xlu1 %2345 }
0x1586   :  { %4389 = vrcp.f32 %v2346_v9 }
0x1588   :  { %v2520_v10 = vpop.xlane.xlu0 %2519 }
0x1589   :  { %4391 = vrcp.f32 %v2520_v10  ;;  %v2870_v15 = vpop.permute.xlu1 %2869 }
0x158c   :  { %v3040_v16 = vpop.permute.xlu0 %3039 }
0x1592   :  { %v4388_v11 = vpop.eup %4387 }
0x1593   :  { %v2178_v12 = vmul.f32 %v4388_v11, %v4372_v34  ;;  %v4390_v13 = vpop.eup %4389  ;;  %v3932_v11 = vld [vmem:[%s5279_s14 + $0x78] sm:$0xff] }
0x1594   :  { %v2348_v39 = vmul.f32 %v4390_v13, %v5076_v41  ;;  %v3929_v13 = vld [vmem:[%s5279_s14 + $0x60] sm:$0xff] }
0x1595   :  { %4201 = vmatmul.mubr.msk.f32.vlgmr.msra.gmra.mxu1 %vm380_vm7, %v2178_v12  ;;  %v3931_v12 = vld [vmem:[%s5279_s14 + $0x70] sm:$0xff] }
0x1596   :  { %4209 = vmatpush3.msk.msra.mxu1 %vm384_vm5, %v2350_v5  ;;  %4210 = vmatprep.mubr.msk.f32.mxu1 %vm4432_vm2, %v4431_v1  ;;  %v4392_v40 = vpop.eup %4391 }
0x1597   :  { %4218 = vmatprep.subr.mxu1 %v4431_v1  ;;  %v2522_v14 = vmul.f32 %v4392_v40, %v5081_v43  ;;  %v3927_v40 = vld [vmem:[%s5279_s14 + $0x50] sm:$0xff] }
0x1599   :  { %4211 = vmatmul.mubr.msk.f32.vlgmr.msra.gmra.mxu1 %vm380_vm7, %v2348_v39  ;;  %v3928_v39 = vld [vmem:[%s5279_s14 + $0x58] sm:$0xff] }
0x159a   :  { %4219 = vmatpush3.msk.msra.mxu1 %vm384_vm5, %v2524_v37  ;;  %4220 = vmatprep.mubr.msk.f32.mxu1 %vm4432_vm2, %v4431_v1 }
0x159b   :  { %4228 = vmatprep.subr.mxu1 %v4431_v1 }
0x159d   :  { %4221 = vmatmul.mubr.msk.f32.vlgmr.msra.gmra.mxu1 %vm380_vm7, %v2522_v14  ;;  %v3926_v14 = vld [vmem:[%s5279_s14 + $0x48] sm:$0xff] }
0x159e   :  { %4229 = vmatpush3.msk.msra.mxu1 %vm384_vm5, %v2698_v6  ;;  %4230 = vmatprep.mubr.msk.f32.mxu1 %vm4432_vm2, %v4431_v1 }
0x159f   :  { %4238 = vmatprep.subr.mxu1 %v4431_v1 }
0x15ba   :  { %v2694_v17 = vpop.xlane.xlu1 %2693 }
0x15bb   :  { %4393 = vrcp.f32 %v2694_v17 }
0x15bd   :  { %v2866_v18 = vpop.xlane.xlu0 %2865 }
0x15be   :  { %v3036_v19 = vpop.xlane.xlu1 %3035  ;;  %4395 = vrcp.f32 %v2866_v18 }
0x15bf   :  { %4397 = vrcp.f32 %v3036_v19 }
0x15c1   :  { %v3210_v20 = vpop.xlane.xlu0 %3209 }
0x15c2   :  { %4399 = vrcp.f32 %v3210_v20  ;;  %v3214_v29 = vpop.permute.xlu1 %3213 }
0x15c8   :  { %v4394_v21 = vpop.eup %4393 }
0x15c9   :  { %v2696_v22 = vmul.f32 %v4394_v21, %v4378_v30  ;;  %v3384_v23 = vpop.xlane.xlu0 %3383  ;;  %v3923_v21 = vld [vmem:[%s5278_s13 + $0x1] ss:$0 sm:$0xff] }
0x15ca   :  { %4401 = vrcp.f32 %v3384_v23 }
0x15cb   :  { %4231 = vmatmul.mubr.msk.f32.vlgmr.msra.gmra.mxu1 %vm380_vm7, %v2696_v22  ;;  %v4396_v24 = vpop.eup %4395 }
0x15cc   :  { %4239 = vmatpush3.msk.msra.mxu1 %vm384_vm5, %v2870_v15  ;;  %4240 = vmatprep.mubr.msk.f32.mxu1 %vm4432_vm2, %v4431_v1  ;;  %v2868_v25 = vmul.f32 %v4396_v24, %v5089_v38  ;;  %v4398_v26 = vpop.eup %4397  ;;  %v3925_v15 = vld [vmem:[%s5279_s14 + $0x40] sm:$0xff] }
0x15cd   :  { %4248 = vmatprep.subr.mxu1 %v4431_v1  ;;  %v3038_v27 = vmul.f32 %v4398_v26, %v5092_v61  ;;  %v3388_v33 = vpop.permute.xlu0 %3387 }
0x15cf   :  { %4241 = vmatmul.mubr.msk.f32.vlgmr.msra.gmra.mxu1 %vm380_vm7, %v2868_v25  ;;  %v4400_v28 = vpop.eup %4399 }
0x15d0   :  { %4249 = vmatpush3.msk.msra.mxu1 %vm384_vm5, %v3040_v16  ;;  %4250 = vmatprep.mubr.msk.f32.mxu1 %vm4432_vm2, %v4431_v1  ;;  %v3212_v31 = vmul.f32 %v4400_v28, %v5098_v0  ;;  %v3920_v0 = vld [vmem:[%s5277_s12 + $0x30] sm:$0xff] }
0x15d1   :  { %4258 = vmatprep.subr.mxu1 %v4431_v1 }
0x15d3   :  { %4251 = vmatmul.mubr.msk.f32.vlgmr.msra.gmra.mxu1 %vm380_vm7, %v3038_v27 }
0x15d4   :  { %4259 = vmatpush3.msk.msra.mxu1 %vm384_vm5, %v3214_v29  ;;  %4260 = vmatprep.mubr.msk.f32.mxu1 %vm4432_vm2, %v4431_v1 }
0x15d5   :  { %4268 = vmatprep.subr.mxu1 %v4431_v1 }
0x15d7   :  { %4261 = vmatmul.mubr.msk.f32.vlgmr.msra.gmra.mxu1 %vm380_vm7, %v3212_v31  ;;  %v4402_v35 = vpop.eup %4401 }
0x15d8   :  { %4269 = vmatpush3.msk.msra.mxu1 %vm384_vm5, %v3388_v33  ;;  %4270 = vmatprep.mubr.msk.f32.mxu1 %vm4432_vm2, %v4431_v1  ;;  %v3386_v32 = vmul.f32 %v4402_v35, %v5102_v3  ;;  %v3918_v3 = vld [vmem:[%s5277_s12 + $0x20] sm:$0xff]  ;;  %s3810_s12 = sshll.u32 %s4447_s19, 4  ;;  %s3811_s12 = int_to_ptr.vmem [resolvable:$true] %s3810_s12 }
0x15d9   :  { %4284 = vmatprep.subr.mxu1 %v4431_v1  ;;  %p4414_p1 = scmp.lt.s32.totalorder %s3811_s12, %s3811_s12 }
0x15db   :  { %4271 = vmatmul.mubr.msk.f32.vlgmr.msra.gmra.mxu1 %vm380_vm7, %v3386_v32 }
0x15dc   :  { %4292 = vmatprep.mubr.msk.f32.mxu1 %vm4432_vm2, %v4431_v1  ;;  %4285 = vmatpush3.msra.mxu1 %v3921_v58 }
0x15dd   :  { %4286 = vmatprep.subr.mxu1 %v4431_v1 }
0x15de   :  { %4287 = vmatpush3.msra.mxu1 %v3920_v0 }
0x15df   :  { %4288 = vmatprep.subr.mxu1 %v4431_v1 }
0x15e0   :  { %4289 = vmatpush3.msra.mxu1 %v3919_v2 }
0x15e1   :  { %4290 = vmatprep.subr.mxu1 %v4431_v1 }
0x15e2   :  { %4291 = vmatpush3.msra.mxu1 %v3918_v3 }
0x1655   :  { %v2252_v34 = vpop.f32.mrf.mxu1 }
0x1656   :  { %2256 = vst.msk [vmem:[#allocation3] sm:$0xf] %vm457_vm8, %v2252_v34 }
0x1657   :  { %v4202_v41 = vpop.f32.mrf.mxu1 }
0x1659   :  { %v2422_v42 = vpop.f32.mrf.mxu1 }
0x165a   :  { %2427 = vrot.lane.b32.xlu1 %v2422_v42, %s4444_s24 }
0x165b   :  { %v4212_v36 = vpop.f32.mrf.mxu1 }
0x165d   :  { %v2596_v43 = vpop.f32.mrf.mxu1 }
0x165e   :  { %2601 = vrot.lane.b32.xlu1 %v2596_v43, %s5308_s29  ;;  %v3916_v43 = vld [vmem:[%s5275_s10 + $0x1] ss:$0 sm:$0xff] }
0x165f   :  { %v4222_v44 = vpop.f32.mrf.mxu1 }
0x168b   :  { %v2770_v45 = vpop.f32.mrf.mxu1 }
0x168c   :  { %2775 = vrot.lane.b32.xlu1 %v2770_v45, %s5309_s25  ;;  %v3934_v45 = vld [vmem:[%s5280_s15 + $0x1] ss:$0 sm:$0xff] }
0x168d   :  { %v4232_v46 = vpop.f32.mrf.mxu1 }
0x168e   :  { %v3917_v46 = vld [vmem:[%s5276_s11 + $0x1] ss:$0 sm:$0xff] }
0x168f   :  { %v2942_v47 = vpop.f32.mrf.mxu1 }
0x1690   :  { %2946 = vst.msk [vmem:[#allocation3 + $0x4] sm:$0xf] %vm457_vm8, %v2942_v47 }
0x1691   :  { %v4242_v51 = vpop.f32.mrf.mxu1 }
0x1693   :  { %v3112_v53 = vpop.f32.mrf.mxu1 }
0x1694   :  { %3117 = vrot.lane.b32.xlu0 %v3112_v53, %s4444_s24 }
0x1695   :  { %v4252_v56 = vpop.f32.mrf.mxu1 }
0x1697   :  { %v3286_v54 = vpop.f32.mrf.mxu1 }
0x1698   :  { %3291 = vrot.lane.b32.xlu0 %v3286_v54, %s5308_s29  ;;  %s4409_s29 = scalar_lea.vmem %s3811_s12, 128 }
0x1699   :  { %v4262_v37 = vpop.f32.mrf.mxu1  ;;  %p4410_p0 = scmp.ne.s32.totalorder %s3811_s12, %s4409_s29  ;;  %p4415_p2 = scmp.lt.s32.totalorder %s4409_s29, %s4409_s29 }
0x169b   :  { %v3460_v30 = vpop.f32.mrf.mxu1  ;;  %p4416_p3 = por %p4415_p2, %p4414_p1 }
0x169c   :  { %3465 = vrot.lane.b32.xlu0 %v3460_v30, %s5309_s25 }
0x169d   :  { %v4272_v48 = vpop.f32.mrf.mxu1  ;;  %p4417_p4 = pnand %p4416_p3, %p4410_p0 }
0x16cc   :  { %v2428_v57 = vpop.permute.xlu1 %2427 }
0x16cd   :  { %2430 = vst.msk [vmem:[#allocation3] sm:$0xf] %vm632_vm9, %v2428_v57 }
0x16d0   :  { %v2602_v38 = vpop.permute.xlu1 %2601 }
0x16d1   :  { %2604 = vst.msk [vmem:[#allocation3] sm:$0xf] %vm807_vm10, %v2602_v38 }
0x16fe   :  { %v2776_v59 = vpop.permute.xlu1 %2775 }
0x16ff   :  { %2778 = vst.msk [vmem:[#allocation3] sm:$0xf] %vm982_vm11, %v2776_v59  ;;  %v3936_v59 = vld [vmem:[%s5281_s16] ss:$0 sm:$0xff] }
0x1706   :  { %v3118_v60 = vpop.permute.xlu0 %3117 }
0x1707   :  { %3120 = vst.msk [vmem:[#allocation3 + $0x4] sm:$0xf] %vm632_vm9, %v3118_v60 }
0x170a   :  { %v3292_v61 = vpop.permute.xlu0 %3291 }
0x170b   :  { %3294 = vst.msk [vmem:[#allocation3 + $0x4] sm:$0xf] %vm807_vm10, %v3292_v61  ;;  %v3937_v61 = vld [vmem:[%s5282_s17] ss:$0 sm:$0xff] }
0x170e   :  { %v3466_v62 = vpop.permute.xlu0 %3465 }
0x170f   :  { %3468 = vst.msk [vmem:[#allocation3 + $0x4] sm:$0xf] %vm982_vm11, %v3466_v62 }
0x1716   :  { %v3469_v63 = vld [vmem:[#allocation3] sm:$0xff] }
0x1717   :  { %4282 = vmatmul.mubr.msk.f32.vlgmr.msra.gmra.mxu0 %vm171_vm1, %v3469_v63 }
0x1718   :  { %4311 = vmatprep.mubr.msk.f32.mxu0 %vm4432_vm2, %v4431_v1  ;;  %4296 = vmatpush3.msra.mxu0 %v3932_v11 }
0x1719   :  { %4297 = vmatprep.subr.mxu0 %v4431_v1 }
0x171a   :  { %4298 = vmatpush3.msra.mxu0 %v3931_v12 }
0x171b   :  { %4299 = vmatprep.subr.mxu0 %v4431_v1 }
0x17d7   :  { %v3552_v5 = vpop.f32.mrf.mxu0 }
0x17d8   :  { %v3553_v6 = vadd.f32 %v3912_v4, %v3552_v5 }
0x17d9   :  { %v4283_v7 = vpop.f32.mrf.mxu0 }
0x17da   :  { %v3556_v9 = vadd.f32 %v3553_v6, %v4942_v8  ;;  %v3930_v8 = vld [vmem:[%s5279_s14 + $0x68] sm:$0xff] }
0x17db   :  { %4300 = vmatpush3.msra.mxu0 %v3930_v8 }
0x17dc   :  { %4293 = vmatmul.mubr.msk.f32.vlgmr.msra.gmra.mxu1 %vm171_vm1, %v3556_v9  ;;  %v3561_v10 = vsel %vm171_vm1, %v3556_v9, 0.0  ;;  %4301 = vmatprep.subr.mxu0 %v4431_v1 }
0x17dd   :  { %3562 = vadd.xlane.f32.xlu1 %v3561_v10  ;;  %4302 = vmatpush3.msra.mxu0 %v3929_v13 }
0x17de   :  { %4303 = vmatprep.subr.mxu0 %v4431_v1 }
0x17df   :  { %4304 = vmatpush3.msra.mxu0 %v3928_v39 }
0x17e0   :  { %4305 = vmatprep.subr.mxu0 %v4431_v1 }
0x17e1   :  { %4306 = vmatpush3.msra.mxu0 %v3927_v40 }
0x17e2   :  { %4307 = vmatprep.subr.mxu0 %v4431_v1 }
0x17e3   :  { %4308 = vmatpush3.msra.mxu0 %v3926_v14 }
0x17e4   :  { %4309 = vmatprep.subr.mxu0 %v4431_v1 }
0x17e5   :  { %4310 = vmatpush3.msra.mxu0 %v3925_v15 }
0x1866   :  { %v3563_v16 = vpop.xlane.xlu1 %3562 }
0x1867   :  { %v3564_v17 = vmul.f32 0.03125, %v3563_v16 }
0x1869   :  { %v3565_v18 = vsub.f32 %v3556_v9, %v3564_v17 }
0x186b   :  { %v3566_v19 = vmul.f32 %v3565_v18, %v3565_v18 }
0x186d   :  { %v3567_v20 = vsel %vm171_vm1, %v3566_v19, 0.0 }
0x186e   :  { %3568 = vadd.xlane.f32.xlu0 %v3567_v20 }
0x189c   :  { %v3670_v22 = vpop.f32.mrf.mxu1 }
0x189d   :  { %v3671_v23 = vadd.f32 %v3923_v21, %v3670_v22 }
0x189e   :  { %v4294_v24 = vpop.f32.mrf.mxu1 }
0x189f   :  { %v3675_v25 = vmul.f32 0.044715, %v3671_v23  ;;  %v3674_v31 = vmul.f32 0.5, %v3671_v23 }
0x18a1   :  { %v3676_v26 = vmul.f32 %v3675_v25, %v3671_v23 }
0x18a3   :  { %v3677_v27 = vmul.f32 %v3676_v26, %v3671_v23 }
0x18a5   :  { %v3678_v28 = vadd.f32 %v3677_v27, %v3671_v23 }
0x18a7   :  { %v3679_v1 = vmul.f32 0.7978846, %v3678_v28 }
0x18a9   :  { %4403 = vtanh.f32 %v3679_v1 }
0x18b6   :  { %v4404_v29 = vpop.eup %4403 }
0x18b7   :  { %v3681_v33 = vadd.f32 1.0, %v4404_v29 }
0x18b9   :  { %v3682_v35 = vmul.f32 %v3681_v33, %v3674_v31 }
0x18bb   :  { %4312 = vmatmul.mubr.msk.f32.vlgmr.msra.gmra.mxu0 %vm93_vm0, %v3682_v35 }
0x18f7   :  { %v3569_v32 = vpop.xlane.xlu0 %3568 }
0x18f8   :  { %v3570_v34 = vmul.f32 0.03125, %v3569_v32 }
0x18fa   :  { %v3571_v41 = vadd.f32 1e-12, %v3570_v34 }
0x18fc   :  { %4405 = vrsqrt.f32 %v3571_v41 }
0x1909   :  { %v4406_v42 = vpop.eup %4405 }
0x190a   :  { %v3573_v36 = vmul.f32 %v4406_v42, %v3565_v18 }
0x190c   :  { %v3580_v44 = vmul.f32 %v3916_v43, %v3573_v36 }
0x190e   :  { %v3587_v50 = vadd.f32 %v3917_v46, %v3580_v44 }
0x197b   :  { %v3769_v47 = vpop.f32.mrf.mxu0 }
0x197c   :  { %v3770_v49 = vadd.f32 %v3934_v45, %v3769_v47 }
0x197d   :  { %v4313_v51 = vpop.f32.mrf.mxu0 }
0x197e   :  { %v3773_v52 = vadd.f32 %v3770_v49, %v3587_v50 }
0x1980   :  { %v3776_v53 = vsel %vm171_vm1, %v3773_v52, 0.0 }
0x1981   :  { %3777 = vadd.xlane.f32.xlu0 %v3776_v53 }
0x1a0a   :  { %v3778_v55 = vpop.xlane.xlu0 %3777 }
0x1a0b   :  { %v3779_v56 = vmul.f32 0.03125, %v3778_v55 }
0x1a0d   :  { %v3780_v54 = vsub.f32 %v3773_v52, %v3779_v56 }
0x1a0f   :  { %v3781_v58 = vmul.f32 %v3780_v54, %v3780_v54 }
0x1a11   :  { %v3782_v37 = vsel %vm171_vm1, %v3781_v58, 0.0 }
0x1a12   :  { %3783 = vadd.xlane.f32.xlu1 %v3782_v37 }
0x1a9b   :  { %v3784_v30 = vpop.xlane.xlu1 %3783 }
0x1a9c   :  { %v3785_v48 = vmul.f32 0.03125, %v3784_v30 }
0x1a9e   :  { %v3786_v57 = vadd.f32 1e-12, %v3785_v48 }
0x1aa0   :  { %4407 = vrsqrt.f32 %v3786_v57 }
0x1aad   :  { %v4408_v38 = vpop.eup %4407 }
0x1aae   :  { %v3788_v60 = vmul.f32 %v4408_v38, %v3780_v54 }
0x1ab0   :  { %v3795_v62 = vmul.f32 %v3936_v59, %v3788_v60 }
0x1ab2   :  { %v3802_v63 = vadd.f32 %v3937_v61, %v3795_v62 }
0x1ab4   :  { %3803 = vst.msk [vmem:[#allocation4] sm:$0xff] %vm171_vm1, %v3802_v63 }
0x1ab5   :  { %4420 = shalt.err (!%p4417_p4)
}
0x1ab6   :  { %3813 = dma.vmem_to_hbm [thread:$0]  %s3811_s12, 128, %s5283_s18, [#allocation5]  }
0x1ab7   :  { %4429 = dma.done.wait [#allocation5], 128  }
0x1ab8   :  { %4430 = vsyncadd [#allocation5], 4294967168 }
0x1ab9   :  { %3817 = vsyncpa [#allocation5], 1 }

</bundles_post_ra>
